<compile_context>
chip_gen: v5e
topology: v5e:2x2
jax: 0.10.0
libtpu: 0.0.40
codegen_flags: <defaults>
</compile_context>

<pallas_src>
import jax
import jax.numpy as jnp
from jax.experimental import pallas as pl
from jax.experimental.pallas import tpu as pltpu

HIDDEN = 64
OUT = 3


def gru_kernel(x_ref,                      # (T*B, I)  time-major, flattened, f32
               wi1_ref,                    # (I, 3H)   bf16
               b1_ref,                     # (1, 3H)   f32  (bi1 + bh1[r,z] fold)
               whb_ref,                    # (2H, 6H)  bf16 block_diag(wh1, wh2)
               bh1n_ref,                   # (1, H)    f32  bh1 n-column
               wi2_ref,                    # (H, 3H)   bf16
               b2_ref,                     # (1, 3H)   f32  (bi2 + bh2[r,z] fold)
               bh2n_ref,                   # (1, H)    f32  bh2 n-column
               wl_ref,                     # (H, 128)  bf16 zero-padded head
               bl_ref,                     # (1, 128)  f32  zero-padded head bias
               out_ref,                    # (B, 128)  f32  lane-dense output
               gi1_ref):                   # scratch (T*B, 3H) f32
    H = HIDDEN
    B = out_ref.shape[0]
    TB = x_ref.shape[0]
    T = TB // B

    # --- Hoisted layer-1 input projection (no sequential dependency): one big MXU call.
    #     b1 already contains bi1 + bh1's r/z columns.
    gi1_ref[...] = (jnp.dot(x_ref[...].astype(jnp.bfloat16), wi1_ref[...],
                            preferred_element_type=jnp.float32) + b1_ref[...])

    # Pre-broadcast per-step biases ONCE (JAX does not CSE broadcast_in_dim; the loop is
    # fully unrolled so per-step broadcasts would be re-emitted T times).
    b2b = jnp.broadcast_to(b2_ref[...], (B, 3 * H))      # bi2 + bh2[r,z]
    bh1nb = jnp.broadcast_to(bh1n_ref[...], (B, H))
    bh2nb = jnp.broadcast_to(bh2n_ref[...], (B, H))

    def step(t, h_packed):
        # h_packed = [h1 | h2], (B, 2H) f32 full-lane vreg.
        h1 = h_packed[:, :H]
        h2 = h_packed[:, H:]

        # One fused (B,2H)@(2H,6H) hidden projection for BOTH layers (MXU call #1).
        gh = jnp.dot(h_packed.astype(jnp.bfloat16), whb_ref[...],
                     preferred_element_type=jnp.float32)
        gh1 = gh[:, :3 * H]
        gh2 = gh[:, 3 * H:]

        off = pl.multiple_of(t * B, B)
        gi1 = gi1_ref[pl.ds(off, B), :]                   # (B, 3H), precomputed

        # --- Layer 1 (gate order [r, z, n], PyTorch semantics).
        rz1 = jax.nn.sigmoid(gi1[:, :2 * H] + gh1[:, :2 * H])
        r1 = rz1[:, :H]
        z1 = rz1[:, H:]
        n1 = jnp.tanh(gi1[:, 2 * H:] + r1 * (gh1[:, 2 * H:] + bh1nb))
        h1n = (1.0 - z1) * n1 + z1 * h1

        # --- Layer 2 (inter-layer dropout = identity at inference). MXU call #2.
        gi2 = jnp.dot(h1n.astype(jnp.bfloat16), wi2_ref[...],
                      preferred_element_type=jnp.float32) + b2b
        rz2 = jax.nn.sigmoid(gi2[:, :2 * H] + gh2[:, :2 * H])
        r2 = rz2[:, :H]
        z2 = rz2[:, H:]
        n2 = jnp.tanh(gi2[:, 2 * H:] + r2 * (gh2[:, 2 * H:] + bh2nb))
        h2n = (1.0 - z2) * n2 + z2 * h2

        return jnp.concatenate([h1n, h2n], axis=1)        # repack [h1 | h2]

    h0 = jnp.zeros((B, 2 * H), jnp.float32)
    h_final = jax.lax.fori_loop(0, T, step, h0, unroll=True)
    h2_final = h_final[:, H:]

    # Final dropout(identity) + lane-dense linear head (128-lane padded -> full vst).
    out_ref[...] = (jnp.dot(h2_final.astype(jnp.bfloat16), wl_ref[...],
                            preferred_element_type=jnp.float32) + bl_ref[...])


def gru_model_forward(x_bti, params):
    """x_bti: (B, T, I) float32 (batch_first, like PyTorch). Returns (B, 3)."""
    B, T, I = x_bti.shape
    assert B % 8 == 0, "batch must be sublane-aligned (multiple of 8)"
    H = HIDDEN

    # Time-major flatten so per-step rows of the hoisted projection are contiguous.
    x2d = jnp.transpose(x_bti, (1, 0, 2)).reshape(T * B, I)

    (wi1, wh1, bi1, bh1, wi2, wh2, bi2, bh2, wl, bl) = params

    # Fold bh r/z columns into the additive input biases (exact algebraic fold).
    zH = jnp.zeros((1, H), jnp.float32)
    b1 = bi1 + jnp.concatenate([bh1[:, :2 * H], zH], axis=1)
    b2 = bi2 + jnp.concatenate([bh2[:, :2 * H], zH], axis=1)
    bh1n = bh1[:, 2 * H:]
    bh2n = bh2[:, 2 * H:]

    # block_diag(wh1, wh2): both hidden projections run as ONE MXU call per step.
    whb = jnp.zeros((2 * H, 6 * H), jnp.float32)
    whb = whb.at[:H, :3 * H].set(wh1).at[H:, 3 * H:].set(wh2)

    # Lane-dense head: pad Linear(64, 3) to 128 output lanes.
    wl_pad = jnp.zeros((H, 128), jnp.float32).at[:, :OUT].set(wl)
    bl_pad = jnp.zeros((1, 128), jnp.float32).at[:, :OUT].set(bl)

    bf = lambda a: a.astype(jnp.bfloat16)
    vmem = lambda: pl.BlockSpec(memory_space=pltpu.MemorySpace.VMEM)

    out_pad = pl.pallas_call(
        gru_kernel,
        out_shape=jax.ShapeDtypeStruct((B, 128), jnp.float32),
        in_specs=[vmem() for _ in range(10)],
        out_specs=vmem(),
        scratch_shapes=[pltpu.VMEM((T * B, 3 * H), jnp.float32)],
    )(x2d, bf(wi1), b1, bf(whb), bh1n, bf(wi2), b2, bh2n, bf(wl_pad), bl_pad)

    return out_pad[:, :OUT]


def init_params(key, input_size):
    """Deterministic param init, PyTorch-style uniform(-1/sqrt(H), 1/sqrt(H))."""
    k = 1.0 / jnp.sqrt(jnp.float32(HIDDEN))
    keys = jax.random.split(key, 10)

    def u(kk, shape):
        return jax.random.uniform(kk, shape, jnp.float32, -k, k)

    # Weights stored already transposed for x @ W: (in_features, 3*H), gate order [r,z,n]
    wi1 = u(keys[0], (input_size, 3 * HIDDEN))
    wh1 = u(keys[1], (HIDDEN, 3 * HIDDEN))
    bi1 = u(keys[2], (1, 3 * HIDDEN))
    bh1 = u(keys[3], (1, 3 * HIDDEN))
    wi2 = u(keys[4], (HIDDEN, 3 * HIDDEN))
    wh2 = u(keys[5], (HIDDEN, 3 * HIDDEN))
    bi2 = u(keys[6], (1, 3 * HIDDEN))
    bh2 = u(keys[7], (1, 3 * HIDDEN))
    # Linear(64, 3): PyTorch init uniform(-1/sqrt(64), 1/sqrt(64)) too
    wl = u(keys[8], (HIDDEN, OUT))
    bl = u(keys[9], (1, OUT))
    return (wi1, wh1, bi1, bh1, wi2, wh2, bi2, bh2, wl, bl)


def gru_model_reference(x_bti, params):
    """Pure-JAX reference for correctness checking (f32 params)."""
    (wi1, wh1, bi1, bh1, wi2, wh2, bi2, bh2, wl, bl) = params
    B, T, I = x_bti.shape
    H = HIDDEN

    def cell(x_t, h, wi, wh, bi, bh):
        gi = x_t @ wi + bi
        gh = h @ wh + bh
        r = jax.nn.sigmoid(gi[:, 0:H] + gh[:, 0:H])
        z = jax.nn.sigmoid(gi[:, H:2 * H] + gh[:, H:2 * H])
        n = jnp.tanh(gi[:, 2 * H:3 * H] + r * gh[:, 2 * H:3 * H])
        return (1.0 - z) * n + z * h

    def step(carry, x_t):
        h1, h2 = carry
        h1 = cell(x_t, h1, wi1, wh1, bi1, bh1)
        h2 = cell(h1, h2, wi2, wh2, bi2, bh2)
        return (h1, h2), None

    h0 = (jnp.zeros((B, H), jnp.float32), jnp.zeros((B, H), jnp.float32))
    (h1, h2), _ = jax.lax.scan(step, h0, jnp.transpose(x_bti, (1, 0, 2)))
    return h2 @ wl + bl


if __name__ == "__main__":
    key = jax.random.PRNGKey(0)
    k_x, k_p = jax.random.split(key)

    B, T, I = 8, 8, 16  # batch, seq_len, input_size
    x = jax.random.normal(k_x, (B, T, I), jnp.float32)
    params = init_params(k_p, I)

    out = gru_model_forward(x, params)
    out = jax.block_until_ready(out)

    ref = gru_model_reference(x, params)
    assert out.shape == (B, OUT)
    # Tolerance accounts for bf16 weight storage (same rounding the TPU MXU applies to
    # f32 operands under default precision).
    assert jnp.allclose(out, ref, rtol=1e-2, atol=1e-2), "mismatch vs JAX reference"

    print("KERNEL_OK")
</pallas_src>

<mosaic_0001>
module attributes {stable_mosaic.version = 11 : i64} {
  func.func @gru_kernel(%arg0: memref<64x16xf32, #tpu.memory_space<vmem>>, %arg1: memref<16x192xbf16, #tpu.memory_space<vmem>>, %arg2: memref<1x192xf32, #tpu.memory_space<vmem>>, %arg3: memref<128x384xbf16, #tpu.memory_space<vmem>>, %arg4: memref<1x64xf32, #tpu.memory_space<vmem>>, %arg5: memref<64x192xbf16, #tpu.memory_space<vmem>>, %arg6: memref<1x192xf32, #tpu.memory_space<vmem>>, %arg7: memref<1x64xf32, #tpu.memory_space<vmem>>, %arg8: memref<64x128xbf16, #tpu.memory_space<vmem>>, %arg9: memref<1x128xf32, #tpu.memory_space<vmem>>, %arg10: memref<8x128xf32, #tpu.memory_space<vmem>>, %arg11: memref<64x192xf32, #tpu.memory_space<vmem>>) attributes {dimension_semantics = [], scalar_prefetch = 0 : i64, scratch_operands = 1 : i64, tpu.core_type = #tpu.core_type<tc>} {
    %c0 = arith.constant 0 : index
    %c0_0 = arith.constant 0 : index
    %0 = vector.load %arg0[%c0, %c0_0] : memref<64x16xf32, #tpu.memory_space<vmem>>, vector<64x16xf32>
    %1 = arith.truncf %0 : vector<64x16xf32> to vector<64x16xbf16>
    %c0_1 = arith.constant 0 : index
    %c0_2 = arith.constant 0 : index
    %2 = vector.load %arg1[%c0_1, %c0_2] : memref<16x192xbf16, #tpu.memory_space<vmem>>, vector<16x192xbf16>
    %cst = arith.constant dense<0.000000e+00> : vector<64x192xf32>
    %3 = tpu.matmul %1, %2, %cst {dimension_numbers = #tpu.dot_dimension_numbers<[1], [0], [0], [1], [0, 0, 1, 1], [], []>} : vector<64x16xbf16>, vector<16x192xbf16>, vector<64x192xf32> -> vector<64x192xf32>
    %c0_3 = arith.constant 0 : index
    %c0_4 = arith.constant 0 : index
    %4 = vector.load %arg2[%c0_3, %c0_4] : memref<1x192xf32, #tpu.memory_space<vmem>>, vector<1x192xf32>
    %5 = vector.broadcast %4 : vector<1x192xf32> to vector<64x192xf32>
    %6 = arith.addf %3, %5 : vector<64x192xf32>
    %c0_5 = arith.constant 0 : index
    %c0_6 = arith.constant 0 : index
    %7 = vector.load %arg11[%c0_5, %c0_6] : memref<64x192xf32, #tpu.memory_space<vmem>>, vector<64x192xf32>
    tpu.vector_store %arg11[%c0_5, %c0_6], %6 {strides = array<i32>} : memref<64x192xf32, #tpu.memory_space<vmem>>, vector<64x192xf32>,
    %c0_7 = arith.constant 0 : index
    %c0_8 = arith.constant 0 : index
    %8 = vector.load %arg6[%c0_7, %c0_8] : memref<1x192xf32, #tpu.memory_space<vmem>>, vector<1x192xf32>
    %9 = vector.shape_cast %8 : vector<1x192xf32> to vector<1x192xf32>
    %10 = vector.broadcast %9 : vector<1x192xf32> to vector<8x192xf32>
    %c0_9 = arith.constant 0 : index
    %c0_10 = arith.constant 0 : index
    %11 = vector.load %arg4[%c0_9, %c0_10] : memref<1x64xf32, #tpu.memory_space<vmem>>, vector<1x64xf32>
    %12 = vector.shape_cast %11 : vector<1x64xf32> to vector<1x64xf32>
    %13 = vector.broadcast %12 : vector<1x64xf32> to vector<8x64xf32>
    %c0_11 = arith.constant 0 : index
    %c0_12 = arith.constant 0 : index
    %14 = vector.load %arg7[%c0_11, %c0_12] : memref<1x64xf32, #tpu.memory_space<vmem>>, vector<1x64xf32>
    %15 = vector.shape_cast %14 : vector<1x64xf32> to vector<1x64xf32>
    %16 = vector.broadcast %15 : vector<1x64xf32> to vector<8x64xf32>
    %cst_13 = arith.constant 0.000000e+00 : f32
    %17 = vector.broadcast %cst_13 : f32 to vector<8x128xf32>
    %c0_i32 = arith.constant 0 : i32
    %18 = vector.extract_strided_slice %17 {offsets = [0, 0], sizes = [8, 64], strides = [1, 1]} : vector<8x128xf32> to vector<8x64xf32>
    %19 = vector.extract_strided_slice %17 {offsets = [0, 64], sizes = [8, 64], strides = [1, 1]} : vector<8x128xf32> to vector<8x64xf32>
    %20 = arith.truncf %17 : vector<8x128xf32> to vector<8x128xbf16>
    %c0_14 = arith.constant 0 : index
    %c0_15 = arith.constant 0 : index
    %21 = vector.load %arg3[%c0_14, %c0_15] : memref<128x384xbf16, #tpu.memory_space<vmem>>, vector<128x384xbf16>
    %cst_16 = arith.constant dense<0.000000e+00> : vector<8x384xf32>
    %22 = tpu.matmul %20, %21, %cst_16 {dimension_numbers = #tpu.dot_dimension_numbers<[1], [0], [0], [1], [0, 0, 1, 1], [], []>} : vector<8x128xbf16>, vector<128x384xbf16>, vector<8x384xf32> -> vector<8x384xf32>
    %23 = vector.extract_strided_slice %22 {offsets = [0, 0], sizes = [8, 192], strides = [1, 1]} : vector<8x384xf32> to vector<8x192xf32>
    %24 = vector.extract_strided_slice %22 {offsets = [0, 192], sizes = [8, 192], strides = [1, 1]} : vector<8x384xf32> to vector<8x192xf32>
    %c8_i32 = arith.constant 8 : i32
    %25 = arith.muli %c0_i32, %c8_i32 : i32
    %26 = tpu.assume_multiple %25, 8 : i32
    %27 = arith.index_cast %26 : i32 to index
    %c0_17 = arith.constant 0 : index
    %28 = vector.load %arg11[%27, %c0_17] : memref<64x192xf32, #tpu.memory_space<vmem>>, vector<8x192xf32>
    %29 = vector.extract_strided_slice %28 {offsets = [0, 0], sizes = [8, 128], strides = [1, 1]} : vector<8x192xf32> to vector<8x128xf32>
    %30 = vector.extract_strided_slice %23 {offsets = [0, 0], sizes = [8, 128], strides = [1, 1]} : vector<8x192xf32> to vector<8x128xf32>
    %31 = arith.addf %29, %30 : vector<8x128xf32>
    %32 = arith.negf %31 : vector<8x128xf32>
    %33 = math.exp %32 : vector<8x128xf32>
    %cst_18 = arith.constant 1.000000e+00 : f32
    %34 = vector.broadcast %cst_18 : f32 to vector<8x128xf32>
    %35 = arith.addf %34, %33 : vector<8x128xf32>
    %36 = arith.divf %34, %35 : vector<8x128xf32>
    %37 = vector.extract_strided_slice %36 {offsets = [0, 0], sizes = [8, 64], strides = [1, 1]} : vector<8x128xf32> to vector<8x64xf32>
    %38 = vector.extract_strided_slice %36 {offsets = [0, 64], sizes = [8, 64], strides = [1, 1]} : vector<8x128xf32> to vector<8x64xf32>
    %39 = vector.extract_strided_slice %28 {offsets = [0, 128], sizes = [8, 64], strides = [1, 1]} : vector<8x192xf32> to vector<8x64xf32>
    %40 = vector.extract_strided_slice %23 {offsets = [0, 128], sizes = [8, 64], strides = [1, 1]} : vector<8x192xf32> to vector<8x64xf32>
    %41 = arith.addf %40, %13 : vector<8x64xf32>
    %42 = arith.mulf %37, %41 : vector<8x64xf32>
    %43 = arith.addf %39, %42 : vector<8x64xf32>
    %44 = math.tanh %43 : vector<8x64xf32>
    %cst_19 = arith.constant 1.000000e+00 : f32
    %45 = vector.broadcast %cst_19 : f32 to vector<8x64xf32>
    %46 = arith.subf %45, %38 : vector<8x64xf32>
    %47 = arith.mulf %46, %44 : vector<8x64xf32>
    %48 = arith.mulf %38, %18 : vector<8x64xf32>
    %49 = arith.addf %47, %48 : vector<8x64xf32>
    %50 = arith.truncf %49 : vector<8x64xf32> to vector<8x64xbf16>
    %c0_20 = arith.constant 0 : index
    %c0_21 = arith.constant 0 : index
    %51 = vector.load %arg5[%c0_20, %c0_21] : memref<64x192xbf16, #tpu.memory_space<vmem>>, vector<64x192xbf16>
    %cst_22 = arith.constant dense<0.000000e+00> : vector<8x192xf32>
    %52 = tpu.matmul %50, %51, %cst_22 {dimension_numbers = #tpu.dot_dimension_numbers<[1], [0], [0], [1], [0, 0, 1, 1], [], []>} : vector<8x64xbf16>, vector<64x192xbf16>, vector<8x192xf32> -> vector<8x192xf32>
    %53 = arith.addf %52, %10 : vector<8x192xf32>
    %54 = vector.extract_strided_slice %53 {offsets = [0, 0], sizes = [8, 128], strides = [1, 1]} : vector<8x192xf32> to vector<8x128xf32>
    %55 = vector.extract_strided_slice %24 {offsets = [0, 0], sizes = [8, 128], strides = [1, 1]} : vector<8x192xf32> to vector<8x128xf32>
    %56 = arith.addf %54, %55 : vector<8x128xf32>
    %57 = arith.negf %56 : vector<8x128xf32>
    %58 = math.exp %57 : vector<8x128xf32>
    %cst_23 = arith.constant 1.000000e+00 : f32
    %59 = vector.broadcast %cst_23 : f32 to vector<8x128xf32>
    %60 = arith.addf %59, %58 : vector<8x128xf32>
    %61 = arith.divf %59, %60 : vector<8x128xf32>
    %62 = vector.extract_strided_slice %61 {offsets = [0, 0], sizes = [8, 64], strides = [1, 1]} : vector<8x128xf32> to vector<8x64xf32>
    %63 = vector.extract_strided_slice %61 {offsets = [0, 64], sizes = [8, 64], strides = [1, 1]} : vector<8x128xf32> to vector<8x64xf32>
    %64 = vector.extract_strided_slice %53 {offsets = [0, 128], sizes = [8, 64], strides = [1, 1]} : vector<8x192xf32> to vector<8x64xf32>
    %65 = vector.extract_strided_slice %24 {offsets = [0, 128], sizes = [8, 64], strides = [1, 1]} : vector<8x192xf32> to vector<8x64xf32>
    %66 = arith.addf %65, %16 : vector<8x64xf32>
    %67 = arith.mulf %62, %66 : vector<8x64xf32>
    %68 = arith.addf %64, %67 : vector<8x64xf32>
    %69 = math.tanh %68 : vector<8x64xf32>
    %cst_24 = arith.constant 1.000000e+00 : f32
    %70 = vector.broadcast %cst_24 : f32 to vector<8x64xf32>
    %71 = arith.subf %70, %63 : vector<8x64xf32>
    %72 = arith.mulf %71, %69 : vector<8x64xf32>
    %73 = arith.mulf %63, %19 : vector<8x64xf32>
    %74 = arith.addf %72, %73 : vector<8x64xf32>
    %75 = tpu.concatenate %49, %74 in 1 : vector<8x64xf32>, vector<8x64xf32> -> vector<8x128xf32>
    %c1_i32 = arith.constant 1 : i32
    %76 = vector.extract_strided_slice %75 {offsets = [0, 0], sizes = [8, 64], strides = [1, 1]} : vector<8x128xf32> to vector<8x64xf32>
    %77 = vector.extract_strided_slice %75 {offsets = [0, 64], sizes = [8, 64], strides = [1, 1]} : vector<8x128xf32> to vector<8x64xf32>
    %78 = arith.truncf %75 : vector<8x128xf32> to vector<8x128xbf16>
    %c0_25 = arith.constant 0 : index
    %c0_26 = arith.constant 0 : index
    %79 = vector.load %arg3[%c0_25, %c0_26] : memref<128x384xbf16, #tpu.memory_space<vmem>>, vector<128x384xbf16>
    %cst_27 = arith.constant dense<0.000000e+00> : vector<8x384xf32>
    %80 = tpu.matmul %78, %79, %cst_27 {dimension_numbers = #tpu.dot_dimension_numbers<[1], [0], [0], [1], [0, 0, 1, 1], [], []>} : vector<8x128xbf16>, vector<128x384xbf16>, vector<8x384xf32> -> vector<8x384xf32>
    %81 = vector.extract_strided_slice %80 {offsets = [0, 0], sizes = [8, 192], strides = [1, 1]} : vector<8x384xf32> to vector<8x192xf32>
    %82 = vector.extract_strided_slice %80 {offsets = [0, 192], sizes = [8, 192], strides = [1, 1]} : vector<8x384xf32> to vector<8x192xf32>
    %c8_i32_28 = arith.constant 8 : i32
    %83 = arith.muli %c1_i32, %c8_i32_28 : i32
    %84 = tpu.assume_multiple %83, 8 : i32
    %85 = arith.index_cast %84 : i32 to index
    %c0_29 = arith.constant 0 : index
    %86 = vector.load %arg11[%85, %c0_29] : memref<64x192xf32, #tpu.memory_space<vmem>>, vector<8x192xf32>
    %87 = vector.extract_strided_slice %86 {offsets = [0, 0], sizes = [8, 128], strides = [1, 1]} : vector<8x192xf32> to vector<8x128xf32>
    %88 = vector.extract_strided_slice %81 {offsets = [0, 0], sizes = [8, 128], strides = [1, 1]} : vector<8x192xf32> to vector<8x128xf32>
    %89 = arith.addf %87, %88 : vector<8x128xf32>
    %90 = arith.negf %89 : vector<8x128xf32>
    %91 = math.exp %90 : vector<8x128xf32>
    %cst_30 = arith.constant 1.000000e+00 : f32
    %92 = vector.broadcast %cst_30 : f32 to vector<8x128xf32>
    %93 = arith.addf %92, %91 : vector<8x128xf32>
    %94 = arith.divf %92, %93 : vector<8x128xf32>
    %95 = vector.extract_strided_slice %94 {offsets = [0, 0], sizes = [8, 64], strides = [1, 1]} : vector<8x128xf32> to vector<8x64xf32>
    %96 = vector.extract_strided_slice %94 {offsets = [0, 64], sizes = [8, 64], strides = [1, 1]} : vector<8x128xf32> to vector<8x64xf32>
    %97 = vector.extract_strided_slice %86 {offsets = [0, 128], sizes = [8, 64], strides = [1, 1]} : vector<8x192xf32> to vector<8x64xf32>
    %98 = vector.extract_strided_slice %81 {offsets = [0, 128], sizes = [8, 64], strides = [1, 1]} : vector<8x192xf32> to vector<8x64xf32>
    %99 = arith.addf %98, %13 : vector<8x64xf32>
    %100 = arith.mulf %95, %99 : vector<8x64xf32>
    %101 = arith.addf %97, %100 : vector<8x64xf32>
    %102 = math.tanh %101 : vector<8x64xf32>
    %cst_31 = arith.constant 1.000000e+00 : f32
    %103 = vector.broadcast %cst_31 : f32 to vector<8x64xf32>
    %104 = arith.subf %103, %96 : vector<8x64xf32>
    %105 = arith.mulf %104, %102 : vector<8x64xf32>
    %106 = arith.mulf %96, %76 : vector<8x64xf32>
    %107 = arith.addf %105, %106 : vector<8x64xf32>
    %108 = arith.truncf %107 : vector<8x64xf32> to vector<8x64xbf16>
    %c0_32 = arith.constant 0 : index
    %c0_33 = arith.constant 0 : index
    %109 = vector.load %arg5[%c0_32, %c0_33] : memref<64x192xbf16, #tpu.memory_space<vmem>>, vector<64x192xbf16>
    %cst_34 = arith.constant dense<0.000000e+00> : vector<8x192xf32>
    %110 = tpu.matmul %108, %109, %cst_34 {dimension_numbers = #tpu.dot_dimension_numbers<[1], [0], [0], [1], [0, 0, 1, 1], [], []>} : vector<8x64xbf16>, vector<64x192xbf16>, vector<8x192xf32> -> vector<8x192xf32>
    %111 = arith.addf %110, %10 : vector<8x192xf32>
    %112 = vector.extract_strided_slice %111 {offsets = [0, 0], sizes = [8, 128], strides = [1, 1]} : vector<8x192xf32> to vector<8x128xf32>
    %113 = vector.extract_strided_slice %82 {offsets = [0, 0], sizes = [8, 128], strides = [1, 1]} : vector<8x192xf32> to vector<8x128xf32>
    %114 = arith.addf %112, %113 : vector<8x128xf32>
    %115 = arith.negf %114 : vector<8x128xf32>
    %116 = math.exp %115 : vector<8x128xf32>
    %cst_35 = arith.constant 1.000000e+00 : f32
    %117 = vector.broadcast %cst_35 : f32 to vector<8x128xf32>
    %118 = arith.addf %117, %116 : vector<8x128xf32>
    %119 = arith.divf %117, %118 : vector<8x128xf32>
    %120 = vector.extract_strided_slice %119 {offsets = [0, 0], sizes = [8, 64], strides = [1, 1]} : vector<8x128xf32> to vector<8x64xf32>
    %121 = vector.extract_strided_slice %119 {offsets = [0, 64], sizes = [8, 64], strides = [1, 1]} : vector<8x128xf32> to vector<8x64xf32>
    %122 = vector.extract_strided_slice %111 {offsets = [0, 128], sizes = [8, 64], strides = [1, 1]} : vector<8x192xf32> to vector<8x64xf32>
    %123 = vector.extract_strided_slice %82 {offsets = [0, 128], sizes = [8, 64], strides = [1, 1]} : vector<8x192xf32> to vector<8x64xf32>
    %124 = arith.addf %123, %16 : vector<8x64xf32>
    %125 = arith.mulf %120, %124 : vector<8x64xf32>
    %126 = arith.addf %122, %125 : vector<8x64xf32>
    %127 = math.tanh %126 : vector<8x64xf32>
    %cst_36 = arith.constant 1.000000e+00 : f32
    %128 = vector.broadcast %cst_36 : f32 to vector<8x64xf32>
    %129 = arith.subf %128, %121 : vector<8x64xf32>
    %130 = arith.mulf %129, %127 : vector<8x64xf32>
    %131 = arith.mulf %121, %77 : vector<8x64xf32>
    %132 = arith.addf %130, %131 : vector<8x64xf32>
    %133 = tpu.concatenate %107, %132 in 1 : vector<8x64xf32>, vector<8x64xf32> -> vector<8x128xf32>
    %c2_i32 = arith.constant 2 : i32
    %134 = vector.extract_strided_slice %133 {offsets = [0, 0], sizes = [8, 64], strides = [1, 1]} : vector<8x128xf32> to vector<8x64xf32>
    %135 = vector.extract_strided_slice %133 {offsets = [0, 64], sizes = [8, 64], strides = [1, 1]} : vector<8x128xf32> to vector<8x64xf32>
    %136 = arith.truncf %133 : vector<8x128xf32> to vector<8x128xbf16>
    %c0_37 = arith.constant 0 : index
    %c0_38 = arith.constant 0 : index
    %137 = vector.load %arg3[%c0_37, %c0_38] : memref<128x384xbf16, #tpu.memory_space<vmem>>, vector<128x384xbf16>
    %cst_39 = arith.constant dense<0.000000e+00> : vector<8x384xf32>
    %138 = tpu.matmul %136, %137, %cst_39 {dimension_numbers = #tpu.dot_dimension_numbers<[1], [0], [0], [1], [0, 0, 1, 1], [], []>} : vector<8x128xbf16>, vector<128x384xbf16>, vector<8x384xf32> -> vector<8x384xf32>
    %139 = vector.extract_strided_slice %138 {offsets = [0, 0], sizes = [8, 192], strides = [1, 1]} : vector<8x384xf32> to vector<8x192xf32>
    %140 = vector.extract_strided_slice %138 {offsets = [0, 192], sizes = [8, 192], strides = [1, 1]} : vector<8x384xf32> to vector<8x192xf32>
    %c8_i32_40 = arith.constant 8 : i32
    %141 = arith.muli %c2_i32, %c8_i32_40 : i32
    %142 = tpu.assume_multiple %141, 8 : i32
    %143 = arith.index_cast %142 : i32 to index
    %c0_41 = arith.constant 0 : index
    %144 = vector.load %arg11[%143, %c0_41] : memref<64x192xf32, #tpu.memory_space<vmem>>, vector<8x192xf32>
    %145 = vector.extract_strided_slice %144 {offsets = [0, 0], sizes = [8, 128], strides = [1, 1]} : vector<8x192xf32> to vector<8x128xf32>
    %146 = vector.extract_strided_slice %139 {offsets = [0, 0], sizes = [8, 128], strides = [1, 1]} : vector<8x192xf32> to vector<8x128xf32>
    %147 = arith.addf %145, %146 : vector<8x128xf32>
    %148 = arith.negf %147 : vector<8x128xf32>
    %149 = math.exp %148 : vector<8x128xf32>
    %cst_42 = arith.constant 1.000000e+00 : f32
    %150 = vector.broadcast %cst_42 : f32 to vector<8x128xf32>
    %151 = arith.addf %150, %149 : vector<8x128xf32>
    %152 = arith.divf %150, %151 : vector<8x128xf32>
    %153 = vector.extract_strided_slice %152 {offsets = [0, 0], sizes = [8, 64], strides = [1, 1]} : vector<8x128xf32> to vector<8x64xf32>
    %154 = vector.extract_strided_slice %152 {offsets = [0, 64], sizes = [8, 64], strides = [1, 1]} : vector<8x128xf32> to vector<8x64xf32>
    %155 = vector.extract_strided_slice %144 {offsets = [0, 128], sizes = [8, 64], strides = [1, 1]} : vector<8x192xf32> to vector<8x64xf32>
    %156 = vector.extract_strided_slice %139 {offsets = [0, 128], sizes = [8, 64], strides = [1, 1]} : vector<8x192xf32> to vector<8x64xf32>
    %157 = arith.addf %156, %13 : vector<8x64xf32>
    %158 = arith.mulf %153, %157 : vector<8x64xf32>
    %159 = arith.addf %155, %158 : vector<8x64xf32>
    %160 = math.tanh %159 : vector<8x64xf32>
    %cst_43 = arith.constant 1.000000e+00 : f32
    %161 = vector.broadcast %cst_43 : f32 to vector<8x64xf32>
    %162 = arith.subf %161, %154 : vector<8x64xf32>
    %163 = arith.mulf %162, %160 : vector<8x64xf32>
    %164 = arith.mulf %154, %134 : vector<8x64xf32>
    %165 = arith.addf %163, %164 : vector<8x64xf32>
    %166 = arith.truncf %165 : vector<8x64xf32> to vector<8x64xbf16>
    %c0_44 = arith.constant 0 : index
    %c0_45 = arith.constant 0 : index
    %167 = vector.load %arg5[%c0_44, %c0_45] : memref<64x192xbf16, #tpu.memory_space<vmem>>, vector<64x192xbf16>
    %cst_46 = arith.constant dense<0.000000e+00> : vector<8x192xf32>
    %168 = tpu.matmul %166, %167, %cst_46 {dimension_numbers = #tpu.dot_dimension_numbers<[1], [0], [0], [1], [0, 0, 1, 1], [], []>} : vector<8x64xbf16>, vector<64x192xbf16>, vector<8x192xf32> -> vector<8x192xf32>
    %169 = arith.addf %168, %10 : vector<8x192xf32>
    %170 = vector.extract_strided_slice %169 {offsets = [0, 0], sizes = [8, 128], strides = [1, 1]} : vector<8x192xf32> to vector<8x128xf32>
    %171 = vector.extract_strided_slice %140 {offsets = [0, 0], sizes = [8, 128], strides = [1, 1]} : vector<8x192xf32> to vector<8x128xf32>
    %172 = arith.addf %170, %171 : vector<8x128xf32>
    %173 = arith.negf %172 : vector<8x128xf32>
    %174 = math.exp %173 : vector<8x128xf32>
    %cst_47 = arith.constant 1.000000e+00 : f32
    %175 = vector.broadcast %cst_47 : f32 to vector<8x128xf32>
    %176 = arith.addf %175, %174 : vector<8x128xf32>
    %177 = arith.divf %175, %176 : vector<8x128xf32>
    %178 = vector.extract_strided_slice %177 {offsets = [0, 0], sizes = [8, 64], strides = [1, 1]} : vector<8x128xf32> to vector<8x64xf32>
    %179 = vector.extract_strided_slice %177 {offsets = [0, 64], sizes = [8, 64], strides = [1, 1]} : vector<8x128xf32> to vector<8x64xf32>
    %180 = vector.extract_strided_slice %169 {offsets = [0, 128], sizes = [8, 64], strides = [1, 1]} : vector<8x192xf32> to vector<8x64xf32>
    %181 = vector.extract_strided_slice %140 {offsets = [0, 128], sizes = [8, 64], strides = [1, 1]} : vector<8x192xf32> to vector<8x64xf32>
    %182 = arith.addf %181, %16 : vector<8x64xf32>
    %183 = arith.mulf %178, %182 : vector<8x64xf32>
    %184 = arith.addf %180, %183 : vector<8x64xf32>
    %185 = math.tanh %184 : vector<8x64xf32>
    %cst_48 = arith.constant 1.000000e+00 : f32
    %186 = vector.broadcast %cst_48 : f32 to vector<8x64xf32>
    %187 = arith.subf %186, %179 : vector<8x64xf32>
    %188 = arith.mulf %187, %185 : vector<8x64xf32>
    %189 = arith.mulf %179, %135 : vector<8x64xf32>
    %190 = arith.addf %188, %189 : vector<8x64xf32>
    %191 = tpu.concatenate %165, %190 in 1 : vector<8x64xf32>, vector<8x64xf32> -> vector<8x128xf32>
    %c3_i32 = arith.constant 3 : i32
    %192 = vector.extract_strided_slice %191 {offsets = [0, 0], sizes = [8, 64], strides = [1, 1]} : vector<8x128xf32> to vector<8x64xf32>
    %193 = vector.extract_strided_slice %191 {offsets = [0, 64], sizes = [8, 64], strides = [1, 1]} : vector<8x128xf32> to vector<8x64xf32>
    %194 = arith.truncf %191 : vector<8x128xf32> to vector<8x128xbf16>
    %c0_49 = arith.constant 0 : index
    %c0_50 = arith.constant 0 : index
    %195 = vector.load %arg3[%c0_49, %c0_50] : memref<128x384xbf16, #tpu.memory_space<vmem>>, vector<128x384xbf16>
    %cst_51 = arith.constant dense<0.000000e+00> : vector<8x384xf32>
    %196 = tpu.matmul %194, %195, %cst_51 {dimension_numbers = #tpu.dot_dimension_numbers<[1], [0], [0], [1], [0, 0, 1, 1], [], []>} : vector<8x128xbf16>, vector<128x384xbf16>, vector<8x384xf32> -> vector<8x384xf32>
    %197 = vector.extract_strided_slice %196 {offsets = [0, 0], sizes = [8, 192], strides = [1, 1]} : vector<8x384xf32> to vector<8x192xf32>
    %198 = vector.extract_strided_slice %196 {offsets = [0, 192], sizes = [8, 192], strides = [1, 1]} : vector<8x384xf32> to vector<8x192xf32>
    %c8_i32_52 = arith.constant 8 : i32
    %199 = arith.muli %c3_i32, %c8_i32_52 : i32
    %200 = tpu.assume_multiple %199, 8 : i32
    %201 = arith.index_cast %200 : i32 to index
    %c0_53 = arith.constant 0 : index
    %202 = vector.load %arg11[%201, %c0_53] : memref<64x192xf32, #tpu.memory_space<vmem>>, vector<8x192xf32>
    %203 = vector.extract_strided_slice %202 {offsets = [0, 0], sizes = [8, 128], strides = [1, 1]} : vector<8x192xf32> to vector<8x128xf32>
    %204 = vector.extract_strided_slice %197 {offsets = [0, 0], sizes = [8, 128], strides = [1, 1]} : vector<8x192xf32> to vector<8x128xf32>
    %205 = arith.addf %203, %204 : vector<8x128xf32>
    %206 = arith.negf %205 : vector<8x128xf32>
    %207 = math.exp %206 : vector<8x128xf32>
    %cst_54 = arith.constant 1.000000e+00 : f32
    %208 = vector.broadcast %cst_54 : f32 to vector<8x128xf32>
    %209 = arith.addf %208, %207 : vector<8x128xf32>
    %210 = arith.divf %208, %209 : vector<8x128xf32>
    %211 = vector.extract_strided_slice %210 {offsets = [0, 0], sizes = [8, 64], strides = [1, 1]} : vector<8x128xf32> to vector<8x64xf32>
    %212 = vector.extract_strided_slice %210 {offsets = [0, 64], sizes = [8, 64], strides = [1, 1]} : vector<8x128xf32> to vector<8x64xf32>
    %213 = vector.extract_strided_slice %202 {offsets = [0, 128], sizes = [8, 64], strides = [1, 1]} : vector<8x192xf32> to vector<8x64xf32>
    %214 = vector.extract_strided_slice %197 {offsets = [0, 128], sizes = [8, 64], strides = [1, 1]} : vector<8x192xf32> to vector<8x64xf32>
    %215 = arith.addf %214, %13 : vector<8x64xf32>
    %216 = arith.mulf %211, %215 : vector<8x64xf32>
    %217 = arith.addf %213, %216 : vector<8x64xf32>
    %218 = math.tanh %217 : vector<8x64xf32>
    %cst_55 = arith.constant 1.000000e+00 : f32
    %219 = vector.broadcast %cst_55 : f32 to vector<8x64xf32>
    %220 = arith.subf %219, %212 : vector<8x64xf32>
    %221 = arith.mulf %220, %218 : vector<8x64xf32>
    %222 = arith.mulf %212, %192 : vector<8x64xf32>
    %223 = arith.addf %221, %222 : vector<8x64xf32>
    %224 = arith.truncf %223 : vector<8x64xf32> to vector<8x64xbf16>
    %c0_56 = arith.constant 0 : index
    %c0_57 = arith.constant 0 : index
    %225 = vector.load %arg5[%c0_56, %c0_57] : memref<64x192xbf16, #tpu.memory_space<vmem>>, vector<64x192xbf16>
    %cst_58 = arith.constant dense<0.000000e+00> : vector<8x192xf32>
    %226 = tpu.matmul %224, %225, %cst_58 {dimension_numbers = #tpu.dot_dimension_numbers<[1], [0], [0], [1], [0, 0, 1, 1], [], []>} : vector<8x64xbf16>, vector<64x192xbf16>, vector<8x192xf32> -> vector<8x192xf32>
    %227 = arith.addf %226, %10 : vector<8x192xf32>
    %228 = vector.extract_strided_slice %227 {offsets = [0, 0], sizes = [8, 128], strides = [1, 1]} : vector<8x192xf32> to vector<8x128xf32>
    %229 = vector.extract_strided_slice %198 {offsets = [0, 0], sizes = [8, 128], strides = [1, 1]} : vector<8x192xf32> to vector<8x128xf32>
    %230 = arith.addf %228, %229 : vector<8x128xf32>
    %231 = arith.negf %230 : vector<8x128xf32>
    %232 = math.exp %231 : vector<8x128xf32>
    %cst_59 = arith.constant 1.000000e+00 : f32
    %233 = vector.broadcast %cst_59 : f32 to vector<8x128xf32>
    %234 = arith.addf %233, %232 : vector<8x128xf32>
    %235 = arith.divf %233, %234 : vector<8x128xf32>
    %236 = vector.extract_strided_slice %235 {offsets = [0, 0], sizes = [8, 64], strides = [1, 1]} : vector<8x128xf32> to vector<8x64xf32>
    %237 = vector.extract_strided_slice %235 {offsets = [0, 64], sizes = [8, 64], strides = [1, 1]} : vector<8x128xf32> to vector<8x64xf32>
    %238 = vector.extract_strided_slice %227 {offsets = [0, 128], sizes = [8, 64], strides = [1, 1]} : vector<8x192xf32> to vector<8x64xf32>
    %239 = vector.extract_strided_slice %198 {offsets = [0, 128], sizes = [8, 64], strides = [1, 1]} : vector<8x192xf32> to vector<8x64xf32>
    %240 = arith.addf %239, %16 : vector<8x64xf32>
    %241 = arith.mulf %236, %240 : vector<8x64xf32>
    %242 = arith.addf %238, %241 : vector<8x64xf32>
    %243 = math.tanh %242 : vector<8x64xf32>
    %cst_60 = arith.constant 1.000000e+00 : f32
    %244 = vector.broadcast %cst_60 : f32 to vector<8x64xf32>
    %245 = arith.subf %244, %237 : vector<8x64xf32>
    %246 = arith.mulf %245, %243 : vector<8x64xf32>
    %247 = arith.mulf %237, %193 : vector<8x64xf32>
    %248 = arith.addf %246, %247 : vector<8x64xf32>
    %249 = tpu.concatenate %223, %248 in 1 : vector<8x64xf32>, vector<8x64xf32> -> vector<8x128xf32>
    %c4_i32 = arith.constant 4 : i32
    %250 = vector.extract_strided_slice %249 {offsets = [0, 0], sizes = [8, 64], strides = [1, 1]} : vector<8x128xf32> to vector<8x64xf32>
    %251 = vector.extract_strided_slice %249 {offsets = [0, 64], sizes = [8, 64], strides = [1, 1]} : vector<8x128xf32> to vector<8x64xf32>
    %252 = arith.truncf %249 : vector<8x128xf32> to vector<8x128xbf16>
    %c0_61 = arith.constant 0 : index
    %c0_62 = arith.constant 0 : index
    %253 = vector.load %arg3[%c0_61, %c0_62] : memref<128x384xbf16, #tpu.memory_space<vmem>>, vector<128x384xbf16>
    %cst_63 = arith.constant dense<0.000000e+00> : vector<8x384xf32>
    %254 = tpu.matmul %252, %253, %cst_63 {dimension_numbers = #tpu.dot_dimension_numbers<[1], [0], [0], [1], [0, 0, 1, 1], [], []>} : vector<8x128xbf16>, vector<128x384xbf16>, vector<8x384xf32> -> vector<8x384xf32>
    %255 = vector.extract_strided_slice %254 {offsets = [0, 0], sizes = [8, 192], strides = [1, 1]} : vector<8x384xf32> to vector<8x192xf32>
    %256 = vector.extract_strided_slice %254 {offsets = [0, 192], sizes = [8, 192], strides = [1, 1]} : vector<8x384xf32> to vector<8x192xf32>
    %c8_i32_64 = arith.constant 8 : i32
    %257 = arith.muli %c4_i32, %c8_i32_64 : i32
    %258 = tpu.assume_multiple %257, 8 : i32
    %259 = arith.index_cast %258 : i32 to index
    %c0_65 = arith.constant 0 : index
    %260 = vector.load %arg11[%259, %c0_65] : memref<64x192xf32, #tpu.memory_space<vmem>>, vector<8x192xf32>
    %261 = vector.extract_strided_slice %260 {offsets = [0, 0], sizes = [8, 128], strides = [1, 1]} : vector<8x192xf32> to vector<8x128xf32>
    %262 = vector.extract_strided_slice %255 {offsets = [0, 0], sizes = [8, 128], strides = [1, 1]} : vector<8x192xf32> to vector<8x128xf32>
    %263 = arith.addf %261, %262 : vector<8x128xf32>
    %264 = arith.negf %263 : vector<8x128xf32>
    %265 = math.exp %264 : vector<8x128xf32>
    %cst_66 = arith.constant 1.000000e+00 : f32
    %266 = vector.broadcast %cst_66 : f32 to vector<8x128xf32>
    %267 = arith.addf %266, %265 : vector<8x128xf32>
    %268 = arith.divf %266, %267 : vector<8x128xf32>
    %269 = vector.extract_strided_slice %268 {offsets = [0, 0], sizes = [8, 64], strides = [1, 1]} : vector<8x128xf32> to vector<8x64xf32>
    %270 = vector.extract_strided_slice %268 {offsets = [0, 64], sizes = [8, 64], strides = [1, 1]} : vector<8x128xf32> to vector<8x64xf32>
    %271 = vector.extract_strided_slice %260 {offsets = [0, 128], sizes = [8, 64], strides = [1, 1]} : vector<8x192xf32> to vector<8x64xf32>
    %272 = vector.extract_strided_slice %255 {offsets = [0, 128], sizes = [8, 64], strides = [1, 1]} : vector<8x192xf32> to vector<8x64xf32>
    %273 = arith.addf %272, %13 : vector<8x64xf32>
    %274 = arith.mulf %269, %273 : vector<8x64xf32>
    %275 = arith.addf %271, %274 : vector<8x64xf32>
    %276 = math.tanh %275 : vector<8x64xf32>
    %cst_67 = arith.constant 1.000000e+00 : f32
    %277 = vector.broadcast %cst_67 : f32 to vector<8x64xf32>
    %278 = arith.subf %277, %270 : vector<8x64xf32>
    %279 = arith.mulf %278, %276 : vector<8x64xf32>
    %280 = arith.mulf %270, %250 : vector<8x64xf32>
    %281 = arith.addf %279, %280 : vector<8x64xf32>
    %282 = arith.truncf %281 : vector<8x64xf32> to vector<8x64xbf16>
    %c0_68 = arith.constant 0 : index
    %c0_69 = arith.constant 0 : index
    %283 = vector.load %arg5[%c0_68, %c0_69] : memref<64x192xbf16, #tpu.memory_space<vmem>>, vector<64x192xbf16>
    %cst_70 = arith.constant dense<0.000000e+00> : vector<8x192xf32>
    %284 = tpu.matmul %282, %283, %cst_70 {dimension_numbers = #tpu.dot_dimension_numbers<[1], [0], [0], [1], [0, 0, 1, 1], [], []>} : vector<8x64xbf16>, vector<64x192xbf16>, vector<8x192xf32> -> vector<8x192xf32>
    %285 = arith.addf %284, %10 : vector<8x192xf32>
    %286 = vector.extract_strided_slice %285 {offsets = [0, 0], sizes = [8, 128], strides = [1, 1]} : vector<8x192xf32> to vector<8x128xf32>
    %287 = vector.extract_strided_slice %256 {offsets = [0, 0], sizes = [8, 128], strides = [1, 1]} : vector<8x192xf32> to vector<8x128xf32>
    %288 = arith.addf %286, %287 : vector<8x128xf32>
    %289 = arith.negf %288 : vector<8x128xf32>
    %290 = math.exp %289 : vector<8x128xf32>
    %cst_71 = arith.constant 1.000000e+00 : f32
    %291 = vector.broadcast %cst_71 : f32 to vector<8x128xf32>
    %292 = arith.addf %291, %290 : vector<8x128xf32>
    %293 = arith.divf %291, %292 : vector<8x128xf32>
    %294 = vector.extract_strided_slice %293 {offsets = [0, 0], sizes = [8, 64], strides = [1, 1]} : vector<8x128xf32> to vector<8x64xf32>
    %295 = vector.extract_strided_slice %293 {offsets = [0, 64], sizes = [8, 64], strides = [1, 1]} : vector<8x128xf32> to vector<8x64xf32>
    %296 = vector.extract_strided_slice %285 {offsets = [0, 128], sizes = [8, 64], strides = [1, 1]} : vector<8x192xf32> to vector<8x64xf32>
    %297 = vector.extract_strided_slice %256 {offsets = [0, 128], sizes = [8, 64], strides = [1, 1]} : vector<8x192xf32> to vector<8x64xf32>
    %298 = arith.addf %297, %16 : vector<8x64xf32>
    %299 = arith.mulf %294, %298 : vector<8x64xf32>
    %300 = arith.addf %296, %299 : vector<8x64xf32>
    %301 = math.tanh %300 : vector<8x64xf32>
    %cst_72 = arith.constant 1.000000e+00 : f32
    %302 = vector.broadcast %cst_72 : f32 to vector<8x64xf32>
    %303 = arith.subf %302, %295 : vector<8x64xf32>
    %304 = arith.mulf %303, %301 : vector<8x64xf32>
    %305 = arith.mulf %295, %251 : vector<8x64xf32>
    %306 = arith.addf %304, %305 : vector<8x64xf32>
    %307 = tpu.concatenate %281, %306 in 1 : vector<8x64xf32>, vector<8x64xf32> -> vector<8x128xf32>
    %c5_i32 = arith.constant 5 : i32
    %308 = vector.extract_strided_slice %307 {offsets = [0, 0], sizes = [8, 64], strides = [1, 1]} : vector<8x128xf32> to vector<8x64xf32>
    %309 = vector.extract_strided_slice %307 {offsets = [0, 64], sizes = [8, 64], strides = [1, 1]} : vector<8x128xf32> to vector<8x64xf32>
    %310 = arith.truncf %307 : vector<8x128xf32> to vector<8x128xbf16>
    %c0_73 = arith.constant 0 : index
    %c0_74 = arith.constant 0 : index
    %311 = vector.load %arg3[%c0_73, %c0_74] : memref<128x384xbf16, #tpu.memory_space<vmem>>, vector<128x384xbf16>
    %cst_75 = arith.constant dense<0.000000e+00> : vector<8x384xf32>
    %312 = tpu.matmul %310, %311, %cst_75 {dimension_numbers = #tpu.dot_dimension_numbers<[1], [0], [0], [1], [0, 0, 1, 1], [], []>} : vector<8x128xbf16>, vector<128x384xbf16>, vector<8x384xf32> -> vector<8x384xf32>
    %313 = vector.extract_strided_slice %312 {offsets = [0, 0], sizes = [8, 192], strides = [1, 1]} : vector<8x384xf32> to vector<8x192xf32>
    %314 = vector.extract_strided_slice %312 {offsets = [0, 192], sizes = [8, 192], strides = [1, 1]} : vector<8x384xf32> to vector<8x192xf32>
    %c8_i32_76 = arith.constant 8 : i32
    %315 = arith.muli %c5_i32, %c8_i32_76 : i32
    %316 = tpu.assume_multiple %315, 8 : i32
    %317 = arith.index_cast %316 : i32 to index
    %c0_77 = arith.constant 0 : index
    %318 = vector.load %arg11[%317, %c0_77] : memref<64x192xf32, #tpu.memory_space<vmem>>, vector<8x192xf32>
    %319 = vector.extract_strided_slice %318 {offsets = [0, 0], sizes = [8, 128], strides = [1, 1]} : vector<8x192xf32> to vector<8x128xf32>
    %320 = vector.extract_strided_slice %313 {offsets = [0, 0], sizes = [8, 128], strides = [1, 1]} : vector<8x192xf32> to vector<8x128xf32>
    %321 = arith.addf %319, %320 : vector<8x128xf32>
    %322 = arith.negf %321 : vector<8x128xf32>
    %323 = math.exp %322 : vector<8x128xf32>
    %cst_78 = arith.constant 1.000000e+00 : f32
    %324 = vector.broadcast %cst_78 : f32 to vector<8x128xf32>
    %325 = arith.addf %324, %323 : vector<8x128xf32>
    %326 = arith.divf %324, %325 : vector<8x128xf32>
    %327 = vector.extract_strided_slice %326 {offsets = [0, 0], sizes = [8, 64], strides = [1, 1]} : vector<8x128xf32> to vector<8x64xf32>
    %328 = vector.extract_strided_slice %326 {offsets = [0, 64], sizes = [8, 64], strides = [1, 1]} : vector<8x128xf32> to vector<8x64xf32>
    %329 = vector.extract_strided_slice %318 {offsets = [0, 128], sizes = [8, 64], strides = [1, 1]} : vector<8x192xf32> to vector<8x64xf32>
    %330 = vector.extract_strided_slice %313 {offsets = [0, 128], sizes = [8, 64], strides = [1, 1]} : vector<8x192xf32> to vector<8x64xf32>
    %331 = arith.addf %330, %13 : vector<8x64xf32>
    %332 = arith.mulf %327, %331 : vector<8x64xf32>
    %333 = arith.addf %329, %332 : vector<8x64xf32>
    %334 = math.tanh %333 : vector<8x64xf32>
    %cst_79 = arith.constant 1.000000e+00 : f32
    %335 = vector.broadcast %cst_79 : f32 to vector<8x64xf32>
    %336 = arith.subf %335, %328 : vector<8x64xf32>
    %337 = arith.mulf %336, %334 : vector<8x64xf32>
    %338 = arith.mulf %328, %308 : vector<8x64xf32>
    %339 = arith.addf %337, %338 : vector<8x64xf32>
    %340 = arith.truncf %339 : vector<8x64xf32> to vector<8x64xbf16>
    %c0_80 = arith.constant 0 : index
    %c0_81 = arith.constant 0 : index
    %341 = vector.load %arg5[%c0_80, %c0_81] : memref<64x192xbf16, #tpu.memory_space<vmem>>, vector<64x192xbf16>
    %cst_82 = arith.constant dense<0.000000e+00> : vector<8x192xf32>
    %342 = tpu.matmul %340, %341, %cst_82 {dimension_numbers = #tpu.dot_dimension_numbers<[1], [0], [0], [1], [0, 0, 1, 1], [], []>} : vector<8x64xbf16>, vector<64x192xbf16>, vector<8x192xf32> -> vector<8x192xf32>
    %343 = arith.addf %342, %10 : vector<8x192xf32>
    %344 = vector.extract_strided_slice %343 {offsets = [0, 0], sizes = [8, 128], strides = [1, 1]} : vector<8x192xf32> to vector<8x128xf32>
    %345 = vector.extract_strided_slice %314 {offsets = [0, 0], sizes = [8, 128], strides = [1, 1]} : vector<8x192xf32> to vector<8x128xf32>
    %346 = arith.addf %344, %345 : vector<8x128xf32>
    %347 = arith.negf %346 : vector<8x128xf32>
    %348 = math.exp %347 : vector<8x128xf32>
    %cst_83 = arith.constant 1.000000e+00 : f32
    %349 = vector.broadcast %cst_83 : f32 to vector<8x128xf32>
    %350 = arith.addf %349, %348 : vector<8x128xf32>
    %351 = arith.divf %349, %350 : vector<8x128xf32>
    %352 = vector.extract_strided_slice %351 {offsets = [0, 0], sizes = [8, 64], strides = [1, 1]} : vector<8x128xf32> to vector<8x64xf32>
    %353 = vector.extract_strided_slice %351 {offsets = [0, 64], sizes = [8, 64], strides = [1, 1]} : vector<8x128xf32> to vector<8x64xf32>
    %354 = vector.extract_strided_slice %343 {offsets = [0, 128], sizes = [8, 64], strides = [1, 1]} : vector<8x192xf32> to vector<8x64xf32>
    %355 = vector.extract_strided_slice %314 {offsets = [0, 128], sizes = [8, 64], strides = [1, 1]} : vector<8x192xf32> to vector<8x64xf32>
    %356 = arith.addf %355, %16 : vector<8x64xf32>
    %357 = arith.mulf %352, %356 : vector<8x64xf32>
    %358 = arith.addf %354, %357 : vector<8x64xf32>
    %359 = math.tanh %358 : vector<8x64xf32>
    %cst_84 = arith.constant 1.000000e+00 : f32
    %360 = vector.broadcast %cst_84 : f32 to vector<8x64xf32>
    %361 = arith.subf %360, %353 : vector<8x64xf32>
    %362 = arith.mulf %361, %359 : vector<8x64xf32>
    %363 = arith.mulf %353, %309 : vector<8x64xf32>
    %364 = arith.addf %362, %363 : vector<8x64xf32>
    %365 = tpu.concatenate %339, %364 in 1 : vector<8x64xf32>, vector<8x64xf32> -> vector<8x128xf32>
    %c6_i32 = arith.constant 6 : i32
    %366 = vector.extract_strided_slice %365 {offsets = [0, 0], sizes = [8, 64], strides = [1, 1]} : vector<8x128xf32> to vector<8x64xf32>
    %367 = vector.extract_strided_slice %365 {offsets = [0, 64], sizes = [8, 64], strides = [1, 1]} : vector<8x128xf32> to vector<8x64xf32>
    %368 = arith.truncf %365 : vector<8x128xf32> to vector<8x128xbf16>
    %c0_85 = arith.constant 0 : index
    %c0_86 = arith.constant 0 : index
    %369 = vector.load %arg3[%c0_85, %c0_86] : memref<128x384xbf16, #tpu.memory_space<vmem>>, vector<128x384xbf16>
    %cst_87 = arith.constant dense<0.000000e+00> : vector<8x384xf32>
    %370 = tpu.matmul %368, %369, %cst_87 {dimension_numbers = #tpu.dot_dimension_numbers<[1], [0], [0], [1], [0, 0, 1, 1], [], []>} : vector<8x128xbf16>, vector<128x384xbf16>, vector<8x384xf32> -> vector<8x384xf32>
    %371 = vector.extract_strided_slice %370 {offsets = [0, 0], sizes = [8, 192], strides = [1, 1]} : vector<8x384xf32> to vector<8x192xf32>
    %372 = vector.extract_strided_slice %370 {offsets = [0, 192], sizes = [8, 192], strides = [1, 1]} : vector<8x384xf32> to vector<8x192xf32>
    %c8_i32_88 = arith.constant 8 : i32
    %373 = arith.muli %c6_i32, %c8_i32_88 : i32
    %374 = tpu.assume_multiple %373, 8 : i32
    %375 = arith.index_cast %374 : i32 to index
    %c0_89 = arith.constant 0 : index
    %376 = vector.load %arg11[%375, %c0_89] : memref<64x192xf32, #tpu.memory_space<vmem>>, vector<8x192xf32>
    %377 = vector.extract_strided_slice %376 {offsets = [0, 0], sizes = [8, 128], strides = [1, 1]} : vector<8x192xf32> to vector<8x128xf32>
    %378 = vector.extract_strided_slice %371 {offsets = [0, 0], sizes = [8, 128], strides = [1, 1]} : vector<8x192xf32> to vector<8x128xf32>
    %379 = arith.addf %377, %378 : vector<8x128xf32>
    %380 = arith.negf %379 : vector<8x128xf32>
    %381 = math.exp %380 : vector<8x128xf32>
    %cst_90 = arith.constant 1.000000e+00 : f32
    %382 = vector.broadcast %cst_90 : f32 to vector<8x128xf32>
    %383 = arith.addf %382, %381 : vector<8x128xf32>
    %384 = arith.divf %382, %383 : vector<8x128xf32>
    %385 = vector.extract_strided_slice %384 {offsets = [0, 0], sizes = [8, 64], strides = [1, 1]} : vector<8x128xf32> to vector<8x64xf32>
    %386 = vector.extract_strided_slice %384 {offsets = [0, 64], sizes = [8, 64], strides = [1, 1]} : vector<8x128xf32> to vector<8x64xf32>
    %387 = vector.extract_strided_slice %376 {offsets = [0, 128], sizes = [8, 64], strides = [1, 1]} : vector<8x192xf32> to vector<8x64xf32>
    %388 = vector.extract_strided_slice %371 {offsets = [0, 128], sizes = [8, 64], strides = [1, 1]} : vector<8x192xf32> to vector<8x64xf32>
    %389 = arith.addf %388, %13 : vector<8x64xf32>
    %390 = arith.mulf %385, %389 : vector<8x64xf32>
    %391 = arith.addf %387, %390 : vector<8x64xf32>
    %392 = math.tanh %391 : vector<8x64xf32>
    %cst_91 = arith.constant 1.000000e+00 : f32
    %393 = vector.broadcast %cst_91 : f32 to vector<8x64xf32>
    %394 = arith.subf %393, %386 : vector<8x64xf32>
    %395 = arith.mulf %394, %392 : vector<8x64xf32>
    %396 = arith.mulf %386, %366 : vector<8x64xf32>
    %397 = arith.addf %395, %396 : vector<8x64xf32>
    %398 = arith.truncf %397 : vector<8x64xf32> to vector<8x64xbf16>
    %c0_92 = arith.constant 0 : index
    %c0_93 = arith.constant 0 : index
    %399 = vector.load %arg5[%c0_92, %c0_93] : memref<64x192xbf16, #tpu.memory_space<vmem>>, vector<64x192xbf16>
    %cst_94 = arith.constant dense<0.000000e+00> : vector<8x192xf32>
    %400 = tpu.matmul %398, %399, %cst_94 {dimension_numbers = #tpu.dot_dimension_numbers<[1], [0], [0], [1], [0, 0, 1, 1], [], []>} : vector<8x64xbf16>, vector<64x192xbf16>, vector<8x192xf32> -> vector<8x192xf32>
    %401 = arith.addf %400, %10 : vector<8x192xf32>
    %402 = vector.extract_strided_slice %401 {offsets = [0, 0], sizes = [8, 128], strides = [1, 1]} : vector<8x192xf32> to vector<8x128xf32>
    %403 = vector.extract_strided_slice %372 {offsets = [0, 0], sizes = [8, 128], strides = [1, 1]} : vector<8x192xf32> to vector<8x128xf32>
    %404 = arith.addf %402, %403 : vector<8x128xf32>
    %405 = arith.negf %404 : vector<8x128xf32>
    %406 = math.exp %405 : vector<8x128xf32>
    %cst_95 = arith.constant 1.000000e+00 : f32
    %407 = vector.broadcast %cst_95 : f32 to vector<8x128xf32>
    %408 = arith.addf %407, %406 : vector<8x128xf32>
    %409 = arith.divf %407, %408 : vector<8x128xf32>
    %410 = vector.extract_strided_slice %409 {offsets = [0, 0], sizes = [8, 64], strides = [1, 1]} : vector<8x128xf32> to vector<8x64xf32>
    %411 = vector.extract_strided_slice %409 {offsets = [0, 64], sizes = [8, 64], strides = [1, 1]} : vector<8x128xf32> to vector<8x64xf32>
    %412 = vector.extract_strided_slice %401 {offsets = [0, 128], sizes = [8, 64], strides = [1, 1]} : vector<8x192xf32> to vector<8x64xf32>
    %413 = vector.extract_strided_slice %372 {offsets = [0, 128], sizes = [8, 64], strides = [1, 1]} : vector<8x192xf32> to vector<8x64xf32>
    %414 = arith.addf %413, %16 : vector<8x64xf32>
    %415 = arith.mulf %410, %414 : vector<8x64xf32>
    %416 = arith.addf %412, %415 : vector<8x64xf32>
    %417 = math.tanh %416 : vector<8x64xf32>
    %cst_96 = arith.constant 1.000000e+00 : f32
    %418 = vector.broadcast %cst_96 : f32 to vector<8x64xf32>
    %419 = arith.subf %418, %411 : vector<8x64xf32>
    %420 = arith.mulf %419, %417 : vector<8x64xf32>
    %421 = arith.mulf %411, %367 : vector<8x64xf32>
    %422 = arith.addf %420, %421 : vector<8x64xf32>
    %423 = tpu.concatenate %397, %422 in 1 : vector<8x64xf32>, vector<8x64xf32> -> vector<8x128xf32>
    %c7_i32 = arith.constant 7 : i32
    %424 = vector.extract_strided_slice %423 {offsets = [0, 0], sizes = [8, 64], strides = [1, 1]} : vector<8x128xf32> to vector<8x64xf32>
    %425 = vector.extract_strided_slice %423 {offsets = [0, 64], sizes = [8, 64], strides = [1, 1]} : vector<8x128xf32> to vector<8x64xf32>
    %426 = arith.truncf %423 : vector<8x128xf32> to vector<8x128xbf16>
    %c0_97 = arith.constant 0 : index
    %c0_98 = arith.constant 0 : index
    %427 = vector.load %arg3[%c0_97, %c0_98] : memref<128x384xbf16, #tpu.memory_space<vmem>>, vector<128x384xbf16>
    %cst_99 = arith.constant dense<0.000000e+00> : vector<8x384xf32>
    %428 = tpu.matmul %426, %427, %cst_99 {dimension_numbers = #tpu.dot_dimension_numbers<[1], [0], [0], [1], [0, 0, 1, 1], [], []>} : vector<8x128xbf16>, vector<128x384xbf16>, vector<8x384xf32> -> vector<8x384xf32>
    %429 = vector.extract_strided_slice %428 {offsets = [0, 0], sizes = [8, 192], strides = [1, 1]} : vector<8x384xf32> to vector<8x192xf32>
    %430 = vector.extract_strided_slice %428 {offsets = [0, 192], sizes = [8, 192], strides = [1, 1]} : vector<8x384xf32> to vector<8x192xf32>
    %c8_i32_100 = arith.constant 8 : i32
    %431 = arith.muli %c7_i32, %c8_i32_100 : i32
    %432 = tpu.assume_multiple %431, 8 : i32
    %433 = arith.index_cast %432 : i32 to index
    %c0_101 = arith.constant 0 : index
    %434 = vector.load %arg11[%433, %c0_101] : memref<64x192xf32, #tpu.memory_space<vmem>>, vector<8x192xf32>
    %435 = vector.extract_strided_slice %434 {offsets = [0, 0], sizes = [8, 128], strides = [1, 1]} : vector<8x192xf32> to vector<8x128xf32>
    %436 = vector.extract_strided_slice %429 {offsets = [0, 0], sizes = [8, 128], strides = [1, 1]} : vector<8x192xf32> to vector<8x128xf32>
    %437 = arith.addf %435, %436 : vector<8x128xf32>
    %438 = arith.negf %437 : vector<8x128xf32>
    %439 = math.exp %438 : vector<8x128xf32>
    %cst_102 = arith.constant 1.000000e+00 : f32
    %440 = vector.broadcast %cst_102 : f32 to vector<8x128xf32>
    %441 = arith.addf %440, %439 : vector<8x128xf32>
    %442 = arith.divf %440, %441 : vector<8x128xf32>
    %443 = vector.extract_strided_slice %442 {offsets = [0, 0], sizes = [8, 64], strides = [1, 1]} : vector<8x128xf32> to vector<8x64xf32>
    %444 = vector.extract_strided_slice %442 {offsets = [0, 64], sizes = [8, 64], strides = [1, 1]} : vector<8x128xf32> to vector<8x64xf32>
    %445 = vector.extract_strided_slice %434 {offsets = [0, 128], sizes = [8, 64], strides = [1, 1]} : vector<8x192xf32> to vector<8x64xf32>
    %446 = vector.extract_strided_slice %429 {offsets = [0, 128], sizes = [8, 64], strides = [1, 1]} : vector<8x192xf32> to vector<8x64xf32>
    %447 = arith.addf %446, %13 : vector<8x64xf32>
    %448 = arith.mulf %443, %447 : vector<8x64xf32>
    %449 = arith.addf %445, %448 : vector<8x64xf32>
    %450 = math.tanh %449 : vector<8x64xf32>
    %cst_103 = arith.constant 1.000000e+00 : f32
    %451 = vector.broadcast %cst_103 : f32 to vector<8x64xf32>
    %452 = arith.subf %451, %444 : vector<8x64xf32>
    %453 = arith.mulf %452, %450 : vector<8x64xf32>
    %454 = arith.mulf %444, %424 : vector<8x64xf32>
    %455 = arith.addf %453, %454 : vector<8x64xf32>
    %456 = arith.truncf %455 : vector<8x64xf32> to vector<8x64xbf16>
    %c0_104 = arith.constant 0 : index
    %c0_105 = arith.constant 0 : index
    %457 = vector.load %arg5[%c0_104, %c0_105] : memref<64x192xbf16, #tpu.memory_space<vmem>>, vector<64x192xbf16>
    %cst_106 = arith.constant dense<0.000000e+00> : vector<8x192xf32>
    %458 = tpu.matmul %456, %457, %cst_106 {dimension_numbers = #tpu.dot_dimension_numbers<[1], [0], [0], [1], [0, 0, 1, 1], [], []>} : vector<8x64xbf16>, vector<64x192xbf16>, vector<8x192xf32> -> vector<8x192xf32>
    %459 = arith.addf %458, %10 : vector<8x192xf32>
    %460 = vector.extract_strided_slice %459 {offsets = [0, 0], sizes = [8, 128], strides = [1, 1]} : vector<8x192xf32> to vector<8x128xf32>
    %461 = vector.extract_strided_slice %430 {offsets = [0, 0], sizes = [8, 128], strides = [1, 1]} : vector<8x192xf32> to vector<8x128xf32>
    %462 = arith.addf %460, %461 : vector<8x128xf32>
    %463 = arith.negf %462 : vector<8x128xf32>
    %464 = math.exp %463 : vector<8x128xf32>
    %cst_107 = arith.constant 1.000000e+00 : f32
    %465 = vector.broadcast %cst_107 : f32 to vector<8x128xf32>
    %466 = arith.addf %465, %464 : vector<8x128xf32>
    %467 = arith.divf %465, %466 : vector<8x128xf32>
    %468 = vector.extract_strided_slice %467 {offsets = [0, 0], sizes = [8, 64], strides = [1, 1]} : vector<8x128xf32> to vector<8x64xf32>
    %469 = vector.extract_strided_slice %467 {offsets = [0, 64], sizes = [8, 64], strides = [1, 1]} : vector<8x128xf32> to vector<8x64xf32>
    %470 = vector.extract_strided_slice %459 {offsets = [0, 128], sizes = [8, 64], strides = [1, 1]} : vector<8x192xf32> to vector<8x64xf32>
    %471 = vector.extract_strided_slice %430 {offsets = [0, 128], sizes = [8, 64], strides = [1, 1]} : vector<8x192xf32> to vector<8x64xf32>
    %472 = arith.addf %471, %16 : vector<8x64xf32>
    %473 = arith.mulf %468, %472 : vector<8x64xf32>
    %474 = arith.addf %470, %473 : vector<8x64xf32>
    %475 = math.tanh %474 : vector<8x64xf32>
    %cst_108 = arith.constant 1.000000e+00 : f32
    %476 = vector.broadcast %cst_108 : f32 to vector<8x64xf32>
    %477 = arith.subf %476, %469 : vector<8x64xf32>
    %478 = arith.mulf %477, %475 : vector<8x64xf32>
    %479 = arith.mulf %469, %425 : vector<8x64xf32>
    %480 = arith.addf %478, %479 : vector<8x64xf32>
    %481 = tpu.concatenate %455, %480 in 1 : vector<8x64xf32>, vector<8x64xf32> -> vector<8x128xf32>
    %c8_i32_109 = arith.constant 8 : i32
    %482 = vector.extract_strided_slice %481 {offsets = [0, 64], sizes = [8, 64], strides = [1, 1]} : vector<8x128xf32> to vector<8x64xf32>
    %483 = arith.truncf %482 : vector<8x64xf32> to vector<8x64xbf16>
    %c0_110 = arith.constant 0 : index
    %c0_111 = arith.constant 0 : index
    %484 = vector.load %arg8[%c0_110, %c0_111] : memref<64x128xbf16, #tpu.memory_space<vmem>>, vector<64x128xbf16>
    %cst_112 = arith.constant dense<0.000000e+00> : vector<8x128xf32>
    %485 = tpu.matmul %483, %484, %cst_112 {dimension_numbers = #tpu.dot_dimension_numbers<[1], [0], [0], [1], [0, 0, 1, 1], [], []>} : vector<8x64xbf16>, vector<64x128xbf16>, vector<8x128xf32> -> vector<8x128xf32>
    %c0_113 = arith.constant 0 : index
    %c0_114 = arith.constant 0 : index
    %486 = vector.load %arg9[%c0_113, %c0_114] : memref<1x128xf32, #tpu.memory_space<vmem>>, vector<1x128xf32>
    %487 = vector.broadcast %486 : vector<1x128xf32> to vector<8x128xf32>
    %488 = arith.addf %485, %487 : vector<8x128xf32>
    %c0_115 = arith.constant 0 : index
    %c0_116 = arith.constant 0 : index
    %489 = vector.load %arg10[%c0_115, %c0_116] : memref<8x128xf32, #tpu.memory_space<vmem>>, vector<8x128xf32>
    tpu.vector_store %arg10[%c0_115, %c0_116], %488 {strides = array<i32>} : memref<8x128xf32, #tpu.memory_space<vmem>>, vector<8x128xf32>,
    return
  }
}

</mosaic_0001>

<bundles_post_ra>
// kernel: tpu_custom_call.1
= control target key start
LH: loop header
LB: loop body
LE: loop exit
PB: predicated region body
PF: predicated region fallthrough
CT: control target
= control target key end

     0   :  { %15 = vsyncpa [#allocation4], 0  ;;  %s2971_s0 = inlined_call_operand.vmem [shape: f32[64,16], index: 0, kind: input, shape index: {}]   ;;  %s2972_s1 = inlined_call_operand.vmem [shape: bf16[16,192], index: 1, kind: input, shape index: {}]   ;;  %s2973_s2 = inlined_call_operand.vmem [shape: f32[1,192], index: 2, kind: input, shape index: {}]   ;;  %s2974_s3 = inlined_call_operand.hbm [shape: bf16[128,384], index: 3, kind: input, shape index: {}]   ;;  %s2975_s4 = inlined_call_operand.hbm [shape: f32[1,64], index: 4, kind: input, shape index: {}]   ;;  %s2976_s5 = inlined_call_operand.vmem [shape: bf16[64,192], index: 5, kind: input, shape index: {}]   ;;  %s2977_s6 = inlined_call_operand.vmem [shape: f32[1,192], index: 6, kind: input, shape index: {}]   ;;  %s2978_s7 = inlined_call_operand.vmem [shape: f32[1,64], index: 7, kind: input, shape index: {}]   ;;  %s2979_s8 = inlined_call_operand.hbm [shape: bf16[64,128], index: 8, kind: input, shape index: {}]   ;;  %s2980_s9 = inlined_call_operand.vmem [shape: f32[1,128], index: 9, kind: input, shape index: {}]   ;;  %s2981_s10 = inlined_call_operand.hbm [shape: f32[8,128], index: 10, kind: output, shape index: {}]  }
   0x1   :  { %16 = vsyncpa [#allocation7], 0  ;;  %s42_s15 = sshll.u32 %s2975_s4, 4  ;;  %s43_s15 = int_to_ptr.hbm [resolvable:$true] %s42_s15 }
   0x2   :  { %17 = vsyncpa [#allocation5], 0  ;;  %s2247_s16 = smov [#allocation6]   ;;  %s28_s20 = sshll.u32 %s2974_s3, 4  ;;  %s29_s20 = int_to_ptr.hbm [resolvable:$true] %s28_s20 }
   0x3   :  { %s44_s17 = sshll.u32 %s2247_s16, 4  ;;  %s2248_s21 = smov [#allocation3]   ;;  %s45_s17 = int_to_ptr.vmem [resolvable:$true] %s44_s17 }
   0x4   :  { %47 = dma.hbm_to_vmem [thread:$0]  %s43_s15, 16, %s45_s17, [#allocation7]  }
   0x5   :  { %s30_s22 = sshll.u32 %s2248_s21, 4  ;;  %s2249_s23 = smov 192   ;;  %s31_s22 = int_to_ptr.vmem [resolvable:$true] %s30_s22 }
   0x6   :  { %s2250_s24 = smov 12   ;;  %s58_s4 = sshll.u32 %s2979_s8, 4  ;;  %s59_s4 = int_to_ptr.hbm [resolvable:$true] %s58_s4 }
   0x7   :  { %36 = dma.hbm_to_vmem [thread:$0]  %s29_s20, 3072, %s31_s22, [#allocation4], %s2249_s23, %s2249_s23, %s2250_s24  }
   0x8   :  { %s2251_s27 = smov [#allocation8]   ;;  %s2252_s29 = smov 64  }
   0x9   :  { %s60_s28 = sshll.u32 %s2251_s27, 4  ;;  %s2253_s30 = smov 4   ;;  %s61_s28 = int_to_ptr.vmem [resolvable:$true] %s60_s28 }
   0xa   :  { %66 = dma.hbm_to_vmem [thread:$0]  %s59_s4, 512, %s61_s28, [#allocation7], %s2252_s29, %s2252_s29, %s2253_s30  }
   0xb   :  { %2241 = dma.done.wait [#allocation4], 3072  }
   0xc   :  { %2242 = vsyncadd [#allocation4], 4294964224 }
   0xd   :  { %2243 = dma.done.wait [#allocation7], 528  }
   0xe   :  { %2244 = vsyncadd [#allocation7], 4294966768  ;;  %v1907_v0 = vld [vmem:[#allocation3 + $0xa8] sm:$0xf]  ;;  %v2022_v1 = vld [vmem:[#allocation3 + $0xb0] sm:$0xf0] }
   0xf   :  { %v1895_v2 = vld [vmem:[#allocation3 + $0x90] sm:$0xf]  ;;  %v2322_v3 = vor.u32 %v2022_v1, %v1907_v0  ;;  %v2019_v4 = vld [vmem:[#allocation3 + $0x98] sm:$0xf0]  ;;  %v1807_v5 = vld [vmem:[%s2972_s1] sm:$0xf] }
  0x10   :  { %v2328_v6 = vor.u32 %v2019_v4, %v1895_v2  ;;  %v1883_v7 = vld [vmem:[#allocation3 + $0x78] sm:$0xf]  ;;  %v1999_v8 = vld [vmem:[%s2972_s1 + $0x4] sm:$0xf0]  ;;  %v2016_v9 = vld [vmem:[#allocation3 + $0x80] sm:$0xf0] }
  0x11   :  { %373 = vmatpush.bf16.msra.mxu2 %v2322_v3  ;;  %v1808_v10 = vor.u32 %v1999_v8, %v1807_v5  ;;  %v82_v11 = vld [vmem:[%s2971_s0] sm:$0xff]  ;;  %v83_v12 = vld [vmem:[%s2971_s0 + $0x8] sm:$0xff]  ;;  %v1909_v15 = vld [vmem:[#allocation3 + $0xb4] sm:$0xf0]  ;;  %vm112_vm0 = vcmask 130048   ;;  %v2342_v18 = vor.u32 %v2016_v9, %v1883_v7  ;;  %v2254_v1 = vmov 0  }
  0x12   :  { %v90_v13 = vpack.c.bf16 %v83_v12, %v82_v11  ;;  %v2021_v14 = vld [vmem:[#allocation3 + $0xac] sm:$0xf]  ;;  %v2018_v17 = vld [vmem:[#allocation3 + $0x94] sm:$0xf]  ;;  %v1897_v19 = vld [vmem:[#allocation3 + $0x9c] sm:$0xf0] }
  0x13   :  { %132 = vmatpush.bf16.msra.mxu0 %v1808_v10  ;;  %v2339_v16 = vor.u32 %v2021_v14, %v1909_v15  ;;  %v1871_v20 = vld [vmem:[#allocation3 + $0x60] sm:$0xf]  ;;  %v2013_v21 = vld [vmem:[#allocation3 + $0x68] sm:$0xf0]  ;;  %v2346_v22 = vor.u32 %v2018_v17, %v1897_v19  ;;  %v2015_v23 = vld [vmem:[#allocation3 + $0x7c] sm:$0xf] }
  0x14   :  { %v1885_v24 = vld [vmem:[#allocation3 + $0x84] sm:$0xf0]  ;;  %v2350_v25 = vor.u32 %v2013_v21, %v1871_v20  ;;  %v1998_v26 = vld [vmem:[%s2972_s1 + $0x4] sm:$0xf]  ;;  %v1809_v27 = vld [vmem:[%s2972_s1 + $0x8] sm:$0xf0] }
  0x15   :  { %374 = vmatpush.bf16.msra.mxu2 %v2328_v6  ;;  %386 = vmatpush.bf16.msra.mxu3 %v2339_v16  ;;  %v1859_v28 = vld [vmem:[#allocation3 + $0x48] sm:$0xf]  ;;  %v2010_v29 = vld [vmem:[#allocation3 + $0x50] sm:$0xf0]  ;;  %v2360_v30 = vor.u32 %v2015_v23, %v1885_v24  ;;  %v1812_v31 = vor.u32 %v1998_v26, %v1809_v27  ;;  %v2012_v32 = vld [vmem:[#allocation3 + $0x64] sm:$0xf] }
  0x16   :  { %1813 = vmatmul.msk.bf16.vlgmr.msra.gmra.mxu0 %vm112_vm0, %v90_v13  ;;  %v1873_v33 = vld [vmem:[#allocation3 + $0x6c] sm:$0xf0]  ;;  %v2363_v34 = vor.u32 %v2010_v29, %v1859_v28  ;;  %v2007_v36 = vld [vmem:[#allocation3 + $0x38] sm:$0xf0]  ;;  %v2009_v38 = vld [vmem:[#allocation3 + $0x4c] sm:$0xf] }
  0x17   :  { %583 = vmatpush.bf16.msrb.mxu0 %v2322_v3  ;;  %161 = vmatpush.bf16.msra.mxu1 %v1812_v31  ;;  %v1847_v35 = vld [vmem:[#allocation3 + $0x30] sm:$0xf]  ;;  %v2367_v37 = vor.u32 %v2012_v32, %v1873_v33  ;;  %v1861_v39 = vld [vmem:[#allocation3 + $0x54] sm:$0xf0]  ;;  %v2004_v42 = vld [vmem:[#allocation3 + $0x20] sm:$0xf0] }
  0x18   :  { %v2372_v40 = vor.u32 %v2007_v36, %v1847_v35  ;;  %v1835_v41 = vld [vmem:[#allocation3 + $0x18] sm:$0xf]  ;;  %v2376_v43 = vor.u32 %v2009_v38, %v1861_v39  ;;  %v2006_v44 = vld [vmem:[#allocation3 + $0x34] sm:$0xf]  ;;  %v1849_v45 = vld [vmem:[#allocation3 + $0x3c] sm:$0xf0] }
  0x19   :  { %375 = vmatpush.bf16.msra.mxu2 %v2342_v18  ;;  %387 = vmatpush.bf16.msra.mxu3 %v2346_v22  ;;  %v2380_v46 = vor.u32 %v2004_v42, %v1835_v41  ;;  %v1823_v47 = vld [vmem:[#allocation3] sm:$0xf]  ;;  %v2001_v48 = vld [vmem:[#allocation3 + $0x8] sm:$0xf0]  ;;  %v2384_v49 = vor.u32 %v2006_v44, %v1849_v45  ;;  %v2003_v50 = vld [vmem:[#allocation3 + $0x1c] sm:$0xf] }
  0x1a   :  { %1817 = vmatmul.msk.bf16.vlgmr.msra.gmra.mxu1 %vm112_vm0, %v90_v13  ;;  %v1837_v51 = vld [vmem:[#allocation3 + $0x24] sm:$0xf0]  ;;  %v1915_v52 = vld [vmem:[#allocation3 + $0xb0] sm:$0xf]  ;;  %v2023_v53 = vld [vmem:[#allocation3 + $0xb8] sm:$0xf0]  ;;  %v2388_v54 = vor.u32 %v2001_v48, %v1823_v47 }
  0x1b   :  { %584 = vmatpush.bf16.msrb.mxu0 %v2328_v6  ;;  %596 = vmatpush.bf16.msrb.mxu1 %v2339_v16  ;;  %v2392_v55 = vor.u32 %v2003_v50, %v1837_v51  ;;  %v2000_v56 = vld [vmem:[#allocation3 + $0x4] sm:$0xf]  ;;  %v2394_v57 = vor.u32 %v2023_v53, %v1915_v52  ;;  %v1825_v58 = vld [vmem:[#allocation3 + $0xc] sm:$0xf0]  ;;  %v1903_v59 = vld [vmem:[#allocation3 + $0x98] sm:$0xf] }
  0x1c   :  { %v2020_v60 = vld [vmem:[#allocation3 + $0xa0] sm:$0xf0]  ;;  %v2400_v61 = vor.u32 %v2000_v56, %v1825_v58  ;;  %v1891_v63 = vld [vmem:[#allocation3 + $0x80] sm:$0xf]  ;;  %v2017_v0 = vld [vmem:[#allocation3 + $0x88] sm:$0xf0] }
  0x1d   :  { %376 = vmatpush.bf16.msra.mxu2 %v2350_v25  ;;  %388 = vmatpush.bf16.msra.mxu3 %v2360_v30  ;;  %v2403_v62 = vor.u32 %v2020_v60, %v1903_v59  ;;  %v2409_v2 = vor.u32 %v2017_v0, %v1891_v63  ;;  %v1879_v4 = vld [vmem:[#allocation3 + $0x68] sm:$0xf]  ;;  %v2014_v5 = vld [vmem:[#allocation3 + $0x70] sm:$0xf0]  ;;  %v1867_v8 = vld [vmem:[#allocation3 + $0x50] sm:$0xf] }
  0x1e   :  { %v2413_v7 = vor.u32 %v2014_v5, %v1879_v4  ;;  %v2011_v9 = vld [vmem:[#allocation3 + $0x58] sm:$0xf0]  ;;  %v1855_v11 = vld [vmem:[#allocation3 + $0x38] sm:$0xf]  ;;  %v2008_v12 = vld [vmem:[#allocation3 + $0x40] sm:$0xf0] }
  0x1f   :  { %585 = vmatpush.bf16.msrb.mxu0 %v2342_v18  ;;  %597 = vmatpush.bf16.msrb.mxu1 %v2346_v22  ;;  %v2417_v10 = vor.u32 %v2011_v9, %v1867_v8  ;;  %v2422_v13 = vor.u32 %v2008_v12, %v1855_v11  ;;  %v1843_v14 = vld [vmem:[#allocation3 + $0x20] sm:$0xf]  ;;  %v2005_v15 = vld [vmem:[#allocation3 + $0x28] sm:$0xf0]  ;;  %v1831_v19 = vld [vmem:[#allocation3 + $0x8] sm:$0xf] }
  0x20   :  { %v2426_v17 = vor.u32 %v2005_v15, %v1843_v14  ;;  %v2002_v20 = vld [vmem:[#allocation3 + $0x10] sm:$0xf0]  ;;  %v96_v23 = vld [vmem:[%s2973_s2] sm:$0x3]  ;;  %vm184_vm1 = vcmask 523264   ;;  %s2255_s20 = smov [#allocation9]  }
  0x21   :  { %377 = vmatpush.bf16.msra.mxu2 %v2363_v34  ;;  %389 = vmatpush.bf16.msra.mxu3 %v2367_v37  ;;  %v2430_v21 = vor.u32 %v2002_v20, %v1831_v19  ;;  %v2449_v24 = vperm.slane %v96_v23, 0  ;;  %v2046_v32 = vld [vmem:[%s2978_s7] ss:$0 sm:$0xff]  ;;  %v2458_v33 = vperm.slane %v96_v23, 1  ;;  %v1944_v19 = vld [vmem:[%s2976_s5 + $0x30] sm:$0xf] }
  0x22   :  { %558 = vrot.lane.b32.xlu1 %v2046_v32, %s2252_s29  ;;  %v2466_v56 = vld [vmem:[#allocation6] ss:$0 sm:$0xff]  ;;  %v2031_v20 = vld [vmem:[%s2976_s5 + $0x34] sm:$0xf0]  ;;  %s1785_s1 = sshll.u32 %s2255_s20, 4  ;;  %s1787_s23 = sshll.u32 %s2981_s10, 4  ;;  %s1786_s1 = int_to_ptr.vmem [resolvable:$true] %s1785_s1  ;;  %s1788_s23 = int_to_ptr.hbm [resolvable:$true] %s1787_s23 }
  0x23   :  { %586 = vmatpush.bf16.msrb.mxu0 %v2350_v25  ;;  %598 = vmatpush.bf16.msrb.mxu1 %v2360_v30  ;;  %v1936_v23 = vld [vmem:[%s2976_s5 + $0x20] sm:$0xf]  ;;  %v2027_v32 = vld [vmem:[%s2976_s5 + $0x14] sm:$0xf0] }
  0x25   :  { %378 = vmatpush.bf16.msra.mxu2 %v2372_v40  ;;  %390 = vmatpush.bf16.msra.mxu3 %v2376_v43 }
  0x27   :  { %587 = vmatpush.bf16.msrb.mxu0 %v2363_v34  ;;  %599 = vmatpush.bf16.msrb.mxu1 %v2367_v37 }
  0x29   :  { %379 = vmatpush.bf16.msra.mxu2 %v2380_v46  ;;  %391 = vmatpush.bf16.msra.mxu3 %v2384_v49 }
  0x2b   :  { %588 = vmatpush.bf16.msrb.mxu0 %v2372_v40  ;;  %600 = vmatpush.bf16.msrb.mxu1 %v2376_v43 }
  0x2d   :  { %380 = vmatpush.bf16.msra.mxu2 %v2388_v54  ;;  %392 = vmatpush.bf16.msra.mxu3 %v2392_v55 }
  0x2f   :  { %589 = vmatpush.bf16.msrb.mxu0 %v2380_v46  ;;  %601 = vmatpush.bf16.msrb.mxu1 %v2384_v49 }
  0x30   :  { %381 = vmatmul.bf16.vlgmr.msra.gmra.mxu2 %v2254_v1 }
  0x31   :  { %399 = vmatpush.bf16.msrb.mxu2 %v2394_v57  ;;  %393 = vmatpush.bf16.msra.mxu3 %v2400_v61 }
  0x33   :  { %590 = vmatpush.bf16.msrb.mxu0 %v2388_v54  ;;  %602 = vmatpush.bf16.msrb.mxu1 %v2392_v55 }
  0x34   :  { %394 = vmatmul.bf16.vlgmr.msra.gmra.mxu3 %v2254_v1 }
  0x35   :  { %400 = vmatpush.bf16.msrb.mxu2 %v2403_v62 }
  0x37   :  { %603 = vmatpush.bf16.msrb.mxu1 %v2400_v61 }
  0x39   :  { %401 = vmatpush.bf16.msrb.mxu2 %v2409_v2 }
  0x3b   :  { %746 = vmatpush.bf16.msra.mxu1 %v2322_v3 }
  0x3d   :  { %402 = vmatpush.bf16.msrb.mxu2 %v2413_v7 }
  0x3f   :  { %747 = vmatpush.bf16.msra.mxu1 %v2328_v6 }
  0x41   :  { %403 = vmatpush.bf16.msrb.mxu2 %v2417_v10 }
  0x43   :  { %748 = vmatpush.bf16.msra.mxu1 %v2342_v18 }
  0x45   :  { %404 = vmatpush.bf16.msrb.mxu2 %v2422_v13 }
  0x47   :  { %749 = vmatpush.bf16.msra.mxu1 %v2350_v25 }
  0x49   :  { %405 = vmatpush.bf16.msrb.mxu2 %v2426_v17 }
  0x4b   :  { %750 = vmatpush.bf16.msra.mxu1 %v2363_v34 }
  0x4d   :  { %406 = vmatpush.bf16.msrb.mxu2 %v2430_v21 }
  0x4f   :  { %751 = vmatpush.bf16.msra.mxu1 %v2372_v40 }
  0x50   :  { %407 = vmatmul.bf16.vlgmr.msrb.gmra.mxu2 %v2254_v1 }
  0x51   :  { %609 = vmatpush.bf16.msra.mxu2 %v2394_v57 }
  0x53   :  { %752 = vmatpush.bf16.msra.mxu1 %v2380_v46 }
  0x55   :  { %610 = vmatpush.bf16.msra.mxu2 %v2403_v62 }
  0x57   :  { %753 = vmatpush.bf16.msra.mxu1 %v2388_v54 }
  0x59   :  { %611 = vmatpush.bf16.msra.mxu2 %v2409_v2 }
  0x5d   :  { %612 = vmatpush.bf16.msra.mxu2 %v2413_v7 }
  0x61   :  { %613 = vmatpush.bf16.msra.mxu2 %v2417_v10 }
  0x65   :  { %614 = vmatpush.bf16.msra.mxu2 %v2422_v13 }
  0x69   :  { %615 = vmatpush.bf16.msra.mxu2 %v2426_v17 }
  0x6d   :  { %616 = vmatpush.bf16.msra.mxu2 %v2430_v21 }
  0x93   :  { %v134_v26 = vpop.f32.mrf.mxu0 }
  0x94   :  { %v135_v27 = vadd.f32 %v134_v26, %v2449_v24  ;;  %v2480_v26 = vor.u32 %v2031_v20, %v1944_v19 }
  0x96   :  { %508 = vmatpush.bf16.msrb.mxu3 %v2480_v26  ;;  %837 = vmatpush.bf16.msrb.mxu2 %v2480_v26 }
  0x97   :  { %v163_v31 = vpop.f32.mrf.mxu1 }
  0x98   :  { %v164_v36 = vadd.f32 %v163_v31, %v2458_v33  ;;  %v1928_v31 = vld [vmem:[%s2976_s5 + $0x10] sm:$0xf] }
  0x9a   :  { %185 = vst.msk [vmem:[#allocation2 + $0x8] sm:$0xff] %vm184_vm1, %v164_v36  ;;  %v1920_v36 = vld [vmem:[%s2976_s5] sm:$0xf] }
  0x9b   :  { %v136_v28 = vpop.f32.mrf.mxu0 }
  0x9c   :  { %v2453_v29 = vadd.f32 %v136_v28, %v2449_v24 }
  0x9f   :  { %v165_v35 = vpop.f32.mrf.mxu1 }
  0xa0   :  { %v166_v38 = vadd.f32 %v165_v35, %v2458_v33  ;;  %v2496_v35 = vor.u32 %v2027_v32, %v1928_v31 }
  0xa1   :  { %v416_v8 = vld [vmem:[#allocation2 + $0x8] sm:$0xff] }
  0xa2   :  { %187 = vst.msk [vmem:[#allocation2 + $0x18] sm:$0xff] %vm184_vm1, %v166_v38  ;;  %v2025_v38 = vld [vmem:[%s2976_s5 + $0x4] sm:$0xf0] }
  0xb3   :  { %v382_v39 = vpop.f32.mrf.mxu2 }
  0xb4   :  { %v417_v41 = vadd.f32 %v382_v39, %v135_v27  ;;  %v2029_v27 = vld [vmem:[%s2976_s5 + $0x24] sm:$0xf0]  ;;  %v2506_v39 = vor.u32 %v2025_v38, %v1920_v36  ;;  %v84_v38 = vld [vmem:[%s2971_s0 + $0x10] sm:$0xff] }
  0xb5   :  { %v2486_v28 = vor.u32 %v2029_v27, %v1936_v23 }
  0xb6   :  { %v1917_v42 = vmul.f32 -1.442695, %v417_v41 }
  0xb7   :  { %v395_v44 = vpop.f32.mrf.mxu3  ;;  %509 = vmatpush.bf16.msrb.mxu3 %v2486_v28  ;;  %838 = vmatpush.bf16.msrb.mxu2 %v2486_v28 }
  0xb8   :  { %2048 = vpow2.f32 %v1917_v42  ;;  %532 = vrot.lane.b32.xlu1 %v395_v44, %s2252_s29  ;;  %v437_v63 = vadd.f32 %v2466_v56, %v395_v44 }
  0xbb   :  { %v384_v45 = vpop.f32.mrf.mxu2  ;;  %510 = vmatpush.bf16.msrb.mxu3 %v2496_v35  ;;  %839 = vmatpush.bf16.msrb.mxu2 %v2496_v35 }
  0xbe   :  { %v2049_v47 = vpop.eup %2048 }
  0xbf   :  { %v421_v48 = vadd.f32 1.0, %v2049_v47  ;;  %v397_v50 = vpop.f32.mrf.mxu3  ;;  %511 = vmatpush.bf16.msrb.mxu3 %v2506_v39  ;;  %840 = vmatpush.bf16.msrb.mxu2 %v2506_v39 }
  0xc0   :  { %v2030_v50 = vld [vmem:[%s2976_s5 + $0x34] sm:$0xf] }
  0xc1   :  { %2050 = vrcp.f32 %v421_v48  ;;  %v433_v58 = vand.u32 2147483648, %v421_v48  ;;  %v431_v60 = vand.u32 2147483647, %v421_v48  ;;  %vm427_vm3 = vweird.f32 %v421_v48 }
  0xc3   :  { %v434_v1 = vor.u32 1.1754944e-38, %v433_v58  ;;  %vm432_vm5 = vcmp.eq.f32.partialorder %v431_v60, 8.507059e+37  ;;  %v1938_v58 = vld [vmem:[%s2976_s5 + $0x28] sm:$0xf0]  ;;  %v2026_v60 = vld [vmem:[%s2976_s5 + $0x14] sm:$0xf] }
  0xc7   :  { %v2051_v51 = vpop.eup %2050 }
  0xc8   :  { %v423_v52 = vmul.f32 %v2051_v51, %v421_v48  ;;  %vm428_vm2 = vweird.f32 %v2051_v51 }
  0xc9   :  { %vm429_vm4 = vmor %vm427_vm3, %vm428_vm2 }
  0xca   :  { %v424_v53 = vsub.f32 1.0, %v423_v52 }
  0xcc   :  { %v425_v59 = vmul.f32 %v2051_v51, %v424_v53  ;;  %v2028_v53 = vld [vmem:[%s2976_s5 + $0x24] sm:$0xf] }
  0xce   :  { %v426_v0 = vadd.f32 %v2051_v51, %v425_v59  ;;  %v2528_v59 = vor.u32 %v2028_v53, %v1938_v58  ;;  %v86_v53 = vld [vmem:[%s2971_s0 + $0x20] sm:$0xff]  ;;  %v87_v58 = vld [vmem:[%s2971_s0 + $0x28] sm:$0xff] }
  0xd0   :  { %v430_v4 = vsel %vm429_vm4, %v2051_v51, %v426_v0  ;;  %v1946_v51 = vld [vmem:[%s2976_s5 + $0x38] sm:$0xf0] }
  0xd1   :  { %v435_v9 = vsel %vm432_vm5, %v434_v1, %v430_v4  ;;  %v2519_v52 = vor.u32 %v2030_v50, %v1946_v51  ;;  %v2024_v1 = vld [vmem:[%s2976_s5 + $0x4] sm:$0xf]  ;;  %v1922_v4 = vld [vmem:[%s2976_s5 + $0x8] sm:$0xf0] }
  0xd2   :  { %v438_v11 = vmul.f32 %v437_v63, %v435_v9  ;;  %v441_v41 = vsub.f32 1.0, %v435_v9  ;;  %v447_v45 = vmul.f32 0.0, %v435_v9  ;;  %v1930_v63 = vld [vmem:[%s2976_s5 + $0x18] sm:$0xf0]  ;;  %v2553_v9 = vpop.permute.xlu1 %558 }
  0xd3   :  { %v408_v5 = vpop.f32.mrf.mxu2  ;;  %521 = vmatpush.bf16.msra.mxu3 %v2519_v52  ;;  %687 = vmatpush.bf16.msra.mxu0 %v2519_v52  ;;  %v2538_v0 = vor.u32 %v2026_v60, %v1930_v63 }
  0xd4   :  { %534 = vrot.lane.b32.xlu2 %v408_v5, %s2252_s29  ;;  %v439_v12 = vadd.f32 %v438_v11, %v416_v8  ;;  %v2548_v8 = vor.u32 %v2024_v1, %v1922_v4  ;;  %v561_v11 = vadd.f32 %v2553_v9, %v408_v5  ;;  %v200_v5 = vld [vmem:[%s2977_s6] sm:$0x3] }
  0xd6   :  { %2052 = vtanh.f32 %v439_v12 }
  0xd7   :  { %522 = vmatpush.bf16.msra.mxu3 %v2528_v59  ;;  %688 = vmatpush.bf16.msra.mxu0 %v2528_v59 }
  0xdb   :  { %v410_v14 = vpop.f32.mrf.mxu2  ;;  %523 = vmatpush.bf16.msra.mxu3 %v2538_v0  ;;  %689 = vmatpush.bf16.msra.mxu0 %v2538_v0 }
  0xdc   :  { %v2053_v15 = vpop.eup %2052  ;;  %563 = vrot.lane.b32.xlu2 %v561_v11, %s2252_s29  ;;  %v2574_v14 = vperm.slane %v200_v5, 0  ;;  %v92_v11 = vpack.c.bf16 %v87_v58, %v86_v53 }
  0xdd   :  { %443 = vrot.lane.b32.xlu0 %v2053_v15, %s2252_s29 }
  0xdf   :  { %524 = vmatpush.bf16.msra.mxu3 %v2548_v8  ;;  %690 = vmatpush.bf16.msra.mxu0 %v2548_v8 }
 0x12a   :  { %v533_v19 = vpop.permute.xlu1 %532 }
 0x12e   :  { %v535_v15 = vpop.permute.xlu2 %534 }
 0x12f   :  { %v536_v27 = vsel %vm184_vm1, %v533_v19, %v535_v15  ;;  %v2592_v15 = vperm.slane %v200_v5, 1  ;;  %v88_v5 = vld [vmem:[%s2971_s0 + $0x30] sm:$0xff] }
 0x14f   :  { %v444_v42 = vpop.permute.xlu0 %443 }
 0x150   :  { %v446_v44 = vmul.f32 %v444_v42, %v441_v41  ;;  %v85_v41 = vld [vmem:[%s2971_s0 + $0x18] sm:$0xff] }
 0x152   :  { %v448_v47 = vadd.f32 %v447_v45, %v446_v44  ;;  %v91_v44 = vpack.c.bf16 %v85_v41, %v84_v38  ;;  %v89_v38 = vld [vmem:[%s2971_s0 + $0x38] sm:$0xff] }
 0x154   :  { %578 = vrot.lane.b32.xlu1 %v448_v47, %s2252_s29  ;;  %v449_v48 = vpack.c.bf16 %v448_v47, %v448_v47  ;;  %1814 = vmatmul.msk.bf16.gmra.mxu0 %vm112_vm0, %v91_v44 }
 0x155   :  { %1818 = vmatmul.msk.bf16.gmra.mxu1 %vm112_vm0, %v91_v44 }
 0x156   :  { %459 = vrot.lane.b32.xlu0 %v449_v48, %s2252_s29 }
 0x164   :  { %1815 = vmatmul.msk.bf16.gmra.mxu0 %vm112_vm0, %v92_v11 }
 0x165   :  { %1819 = vmatmul.msk.bf16.gmra.mxu1 %vm112_vm0, %v92_v11 }
 0x1c8   :  { %v460_v12 = vpop.permute.xlu0 %459 }
 0x1c9   :  { %1950 = vmatmul.msk.bf16.vlgmr.msrb.gmra.mxu3 %vm184_vm1, %v460_v12 }
 0x1ca   :  { %674 = vmatpush.bf16.msrb.mxu3 %v2480_v26 }
 0x1ce   :  { %675 = vmatpush.bf16.msrb.mxu3 %v2486_v28 }
 0x1d1   :  { %v139_v44 = vpop.f32.mrf.mxu0 }
 0x1d2   :  { %676 = vmatpush.bf16.msrb.mxu3 %v2496_v35 }
 0x1d6   :  { %677 = vmatpush.bf16.msrb.mxu3 %v2506_v39 }
 0x1d9   :  { %1951 = vmatmul.msk.bf16.vlgmr.msra.gmra.mxu3 %vm184_vm1, %v460_v12 }
 0x1da   :  { %759 = vmatpush.bf16.msra.mxu3 %v2339_v16 }
 0x1de   :  { %760 = vmatpush.bf16.msra.mxu3 %v2346_v22 }
 0x1e2   :  { %761 = vmatpush.bf16.msra.mxu3 %v2360_v30 }
 0x1e6   :  { %762 = vmatpush.bf16.msra.mxu3 %v2367_v37 }
 0x1ea   :  { %763 = vmatpush.bf16.msra.mxu3 %v2376_v43 }
 0x1ee   :  { %764 = vmatpush.bf16.msra.mxu3 %v2384_v49 }
 0x1f2   :  { %765 = vmatpush.bf16.msra.mxu3 %v2392_v55 }
 0x1f6   :  { %766 = vmatpush.bf16.msra.mxu3 %v2400_v61 }
 0x24c   :  { %v513_v20 = vpop.f32.mrf.mxu3 }
 0x24d   :  { %v514_v23 = vadd.f32 %v513_v20, %v2574_v14 }
 0x24f   :  { %v538_v31 = vadd.f32 %v536_v27, %v514_v23  ;;  %v564_v23 = vpop.permute.xlu2 %563 }
 0x251   :  { %v1952_v32 = vmul.f32 -1.442695, %v538_v31 }
 0x253   :  { %2054 = vpow2.f32 %v1952_v32 }
 0x254   :  { %v515_v36 = vpop.f32.mrf.mxu3 }
 0x259   :  { %v2055_v42 = vpop.eup %2054 }
 0x25a   :  { %v542_v45 = vadd.f32 1.0, %v2055_v42  ;;  %v93_v42 = vpack.c.bf16 %v89_v38, %v88_v5 }
 0x25c   :  { %2056 = vrcp.f32 %v542_v45  ;;  %v526_v47 = vpop.f32.mrf.mxu3  ;;  %v554_v63 = vand.u32 2147483648, %v542_v45  ;;  %v552_v4 = vand.u32 2147483647, %v542_v45  ;;  %vm548_vm7 = vweird.f32 %v542_v45  ;;  %1816 = vmatmul.msk.bf16.gmra.mxu0 %vm112_vm0, %v93_v42  ;;  %1820 = vmatmul.msk.bf16.gmra.mxu1 %vm112_vm0, %v93_v42 }
 0x25d   :  { %v527_v32 = vadd.f32 %v526_v47, %v2592_v15  ;;  %v2607_v47 = vadd.f32 %v139_v44, %v2449_v24 }
 0x25e   :  { %v555_v19 = vor.u32 1.1754944e-38, %v554_v63  ;;  %vm553_vm9 = vcmp.eq.f32.partialorder %v552_v4, 8.507059e+37 }
 0x262   :  { %v2057_v48 = vpop.eup %2056 }
 0x263   :  { %v544_v50 = vmul.f32 %v2057_v48, %v542_v45  ;;  %vm549_vm6 = vweird.f32 %v2057_v48  ;;  %v168_v45 = vpop.f32.mrf.mxu1 }
 0x264   :  { %v528_v51 = vpop.f32.mrf.mxu3  ;;  %vm550_vm8 = vmor %vm548_vm7, %vm549_vm6 }
 0x265   :  { %v545_v60 = vsub.f32 1.0, %v544_v50  ;;  %v141_v50 = vpop.f32.mrf.mxu0 }
 0x266   :  { %v2612_v53 = vadd.f32 %v141_v50, %v2449_v24 }
 0x267   :  { %v546_v1 = vmul.f32 %v2057_v48, %v545_v60 }
 0x269   :  { %v547_v12 = vadd.f32 %v2057_v48, %v546_v1 }
 0x26b   :  { %v551_v20 = vsel %vm550_vm8, %v2057_v48, %v547_v12  ;;  %v169_v48 = vadd.f32 %v168_v45, %v2458_v33  ;;  %v170_v51 = vpop.f32.mrf.mxu1 }
 0x26c   :  { %v556_v27 = vsel %vm553_vm9, %v555_v19, %v551_v20  ;;  %v171_v58 = vadd.f32 %v170_v51, %v2458_v33 }
 0x26d   :  { %v566_v31 = vmul.f32 %v564_v23, %v556_v27  ;;  %189 = vst.msk [vmem:[#allocation2 + $0x28] sm:$0xff] %vm184_vm1, %v169_v48  ;;  %v144_v60 = vpop.f32.mrf.mxu0  ;;  %v569_v1 = vsub.f32 1.0, %v556_v27  ;;  %v575_v19 = vmul.f32 0.0, %v556_v27 }
 0x26e   :  { %191 = vst.msk [vmem:[#allocation2 + $0x38] sm:$0xff] %vm184_vm1, %v171_v58  ;;  %v2617_v4 = vadd.f32 %v144_v60, %v2449_v24 }
 0x26f   :  { %v567_v36 = vadd.f32 %v566_v31, %v527_v32  ;;  %v579_v31 = vpop.permute.xlu1 %578 }
 0x271   :  { %2058 = vtanh.f32 %v567_v36 }
 0x273   :  { %v173_v63 = vpop.f32.mrf.mxu1 }
 0x274   :  { %v174_v11 = vadd.f32 %v173_v63, %v2458_v33 }
 0x275   :  { %v146_v5 = vpop.f32.mrf.mxu0 }
 0x276   :  { %193 = vst.msk [vmem:[#allocation2 + $0x48] sm:$0xff] %vm184_vm1, %v174_v11 }
 0x277   :  { %v2059_v41 = vpop.eup %2058 }
 0x278   :  { %571 = vrot.lane.b32.xlu0 %v2059_v41, %s2252_s29  ;;  %v147_v41 = vadd.f32 %v146_v5, %v2449_v24 }
 0x27a   :  { %194 = vst [vmem:[#allocation2 + $0x50] sm:$0xff] %v147_v41 }
 0x27b   :  { %v175_v38 = vpop.f32.mrf.mxu1 }
 0x27c   :  { %v176_v27 = vadd.f32 %v175_v38, %v2458_v33 }
 0x27e   :  { %195 = vst.msk [vmem:[#allocation2 + $0x58] sm:$0xff] %vm184_vm1, %v176_v27 }
 0x2d9   :  { %v149_v42 = vpop.f32.mrf.mxu0  ;;  %v178_v44 = vpop.f32.mrf.mxu1 }
 0x2da   :  { %v150_v45 = vadd.f32 %v149_v42, %v2449_v24  ;;  %v179_v48 = vadd.f32 %v178_v44, %v2458_v33 }
 0x2dc   :  { %196 = vst [vmem:[#allocation2 + $0x60] sm:$0xff] %v150_v45 }
 0x2dd   :  { %197 = vst.msk [vmem:[#allocation2 + $0x68] sm:$0xff] %vm184_vm1, %v179_v48 }
 0x2e1   :  { %v151_v50 = vpop.f32.mrf.mxu0  ;;  %v180_v58 = vpop.f32.mrf.mxu1 }
 0x2e2   :  { %v152_v51 = vadd.f32 %v151_v50, %v2449_v24  ;;  %v181_v24 = vadd.f32 %v180_v58, %v2458_v33  ;;  %v626_v58 = vld [vmem:[#allocation2 + $0x18] sm:$0xff] }
 0x2e4   :  { %198 = vst [vmem:[#allocation2 + $0x70] sm:$0xff] %v152_v51 }
 0x2e5   :  { %199 = vst.msk [vmem:[#allocation2 + $0x78] sm:$0xff] %vm184_vm1, %v181_v24 }
 0x2ea   :  { %v572_v12 = vpop.permute.xlu0 %571 }
 0x2eb   :  { %v574_v20 = vmul.f32 %v572_v12, %v569_v1 }
 0x2ed   :  { %v576_v23 = vadd.f32 %v575_v19, %v574_v20 }
 0x2ef   :  { %v2622_v32 = vsel %vm184_vm1, %v579_v31, %v576_v23 }
 0x2f0   :  { %658 = vrot.lane.b32.xlu0 %v2622_v32, %s2252_s29  ;;  %v582_v36 = vpack.c.bf16 %v2622_v32, %v2622_v32 }
 0x2f2   :  { %591 = vmatmul.bf16.vlgmr.msrb.gmra.mxu0 %v582_v36  ;;  %604 = vmatmul.bf16.vlgmr.msrb.gmra.mxu1 %v582_v36 }
 0x2f3   :  { %617 = vmatmul.bf16.vlgmr.msra.gmra.mxu2 %v582_v36  ;;  %772 = vmatpush.bf16.msrb.mxu0 %v2394_v57 }
 0x2f4   :  { %850 = vmatpush.bf16.msrb.mxu1 %v2519_v52  ;;  %909 = vmatpush.bf16.msra.mxu2 %v2322_v3 }
 0x2f7   :  { %773 = vmatpush.bf16.msrb.mxu0 %v2403_v62 }
 0x2f8   :  { %851 = vmatpush.bf16.msrb.mxu1 %v2528_v59  ;;  %910 = vmatpush.bf16.msra.mxu2 %v2328_v6 }
 0x2fb   :  { %774 = vmatpush.bf16.msrb.mxu0 %v2409_v2 }
 0x2fc   :  { %852 = vmatpush.bf16.msrb.mxu1 %v2538_v0  ;;  %911 = vmatpush.bf16.msra.mxu2 %v2342_v18 }
 0x2ff   :  { %775 = vmatpush.bf16.msrb.mxu0 %v2413_v7 }
 0x300   :  { %853 = vmatpush.bf16.msrb.mxu1 %v2548_v8  ;;  %912 = vmatpush.bf16.msra.mxu2 %v2350_v25 }
 0x303   :  { %776 = vmatpush.bf16.msrb.mxu0 %v2417_v10 }
 0x304   :  { %913 = vmatpush.bf16.msra.mxu2 %v2363_v34 }
 0x307   :  { %777 = vmatpush.bf16.msrb.mxu0 %v2422_v13 }
 0x308   :  { %914 = vmatpush.bf16.msra.mxu2 %v2372_v40 }
 0x30b   :  { %778 = vmatpush.bf16.msrb.mxu0 %v2426_v17 }
 0x30c   :  { %915 = vmatpush.bf16.msra.mxu2 %v2380_v46 }
 0x30f   :  { %779 = vmatpush.bf16.msrb.mxu0 %v2430_v21 }
 0x310   :  { %916 = vmatpush.bf16.msra.mxu2 %v2388_v54 }
 0x36f   :  { %v592_v60 = vpop.f32.mrf.mxu0  ;;  %v605_v63 = vpop.f32.mrf.mxu1 }
 0x370   :  { %v627_v1 = vadd.f32 %v592_v60, %v2453_v29  ;;  %v647_v48 = vadd.f32 %v2466_v56, %v605_v63 }
 0x372   :  { %v1953_v11 = vmul.f32 -1.442695, %v627_v1 }
 0x374   :  { %2060 = vpow2.f32 %v1953_v11  ;;  %v659_v11 = vpop.permute.xlu0 %658 }
 0x376   :  { %v618_v12 = vpop.f32.mrf.mxu2 }
 0x377   :  { %700 = vrot.lane.b32.xlu0 %v618_v12, %s2252_s29  ;;  %v594_v19 = vpop.f32.mrf.mxu0  ;;  %v607_v20 = vpop.f32.mrf.mxu1 }
 0x37a   :  { %v2061_v23 = vpop.eup %2060 }
 0x37b   :  { %v631_v31 = vadd.f32 1.0, %v2061_v23 }
 0x37d   :  { %2062 = vrcp.f32 %v631_v31  ;;  %v643_v41 = vand.u32 2147483648, %v631_v31  ;;  %v641_v42 = vand.u32 2147483647, %v631_v31  ;;  %vm637_vm11 = vweird.f32 %v631_v31 }
 0x37e   :  { %v620_v36 = vpop.f32.mrf.mxu2 }
 0x37f   :  { %v644_v29 = vor.u32 1.1754944e-38, %v643_v41  ;;  %vm642_vm13 = vcmp.eq.f32.partialorder %v641_v42, 8.507059e+37 }
 0x383   :  { %v2063_v5 = vpop.eup %2062 }
 0x384   :  { %v633_v38 = vmul.f32 %v2063_v5, %v631_v31  ;;  %vm638_vm10 = vweird.f32 %v2063_v5 }
 0x385   :  { %vm639_vm12 = vmor %vm637_vm11, %vm638_vm10 }
 0x386   :  { %v634_v33 = vsub.f32 1.0, %v633_v38 }
 0x388   :  { %v635_v27 = vmul.f32 %v2063_v5, %v634_v33 }
 0x38a   :  { %v636_v44 = vadd.f32 %v2063_v5, %v635_v27 }
 0x38c   :  { %v640_v45 = vsel %vm639_vm12, %v2063_v5, %v636_v44  ;;  %v724_v5 = vadd.f32 %v618_v12, %v2553_v9 }
 0x38d   :  { %v645_v50 = vsel %vm642_vm13, %v644_v29, %v640_v45 }
 0x38e   :  { %v648_v51 = vmul.f32 %v647_v48, %v645_v50  ;;  %v651_v1 = vsub.f32 1.0, %v645_v50  ;;  %v661_v23 = vmul.f32 %v659_v11, %v645_v50 }
 0x390   :  { %v649_v24 = vadd.f32 %v648_v51, %v626_v58 }
 0x392   :  { %2064 = vtanh.f32 %v649_v24 }
 0x398   :  { %v2065_v60 = vpop.eup %2064 }
 0x399   :  { %653 = vrot.lane.b32.xlu2 %v2065_v60, %s2252_s29 }
 0x3a1   :  { %698 = vrot.lane.b32.xlu2 %v605_v63, %s2252_s29 }
 0x3e9   :  { %v701_v41 = vpop.permute.xlu0 %700 }
 0x3f3   :  { %v654_v19 = vpop.permute.xlu2 %653 }
 0x3f4   :  { %v656_v20 = vmul.f32 %v654_v19, %v651_v1 }
 0x3f6   :  { %v662_v31 = vadd.f32 %v661_v23, %v656_v20 }
 0x3f8   :  { %741 = vrot.lane.b32.xlu0 %v662_v31, %s2252_s29  ;;  %v663_v36 = vpack.c.bf16 %v662_v31, %v662_v31 }
 0x3fa   :  { %665 = vrot.lane.b32.xlu1 %v663_v36, %s2252_s29 }
 0x3fb   :  { %v699_v12 = vpop.permute.xlu2 %698 }
 0x3fc   :  { %v702_v42 = vsel %vm184_vm1, %v699_v12, %v701_v41 }
 0x402   :  { %726 = vrot.lane.b32.xlu1 %v724_v5, %s2252_s29 }
 0x46c   :  { %v666_v38 = vpop.permute.xlu1 %665 }
 0x46d   :  { %1954 = vmatmul.msk.bf16.vlgmr.msrb.gmra.mxu3 %vm184_vm1, %v666_v38  ;;  %1955 = vmatmul.msk.bf16.vlgmr.msra.gmra.mxu0 %vm184_vm1, %v666_v38 }
 0x46e   :  { %922 = vmatpush.bf16.msrb.mxu3 %v2339_v16  ;;  %935 = vmatpush.bf16.msra.mxu0 %v2394_v57 }
 0x472   :  { %923 = vmatpush.bf16.msrb.mxu3 %v2346_v22  ;;  %936 = vmatpush.bf16.msra.mxu0 %v2403_v62 }
 0x474   :  { %v727_v36 = vpop.permute.xlu1 %726 }
 0x476   :  { %924 = vmatpush.bf16.msrb.mxu3 %v2360_v30  ;;  %937 = vmatpush.bf16.msra.mxu0 %v2409_v2 }
 0x47a   :  { %925 = vmatpush.bf16.msrb.mxu3 %v2367_v37  ;;  %938 = vmatpush.bf16.msra.mxu0 %v2413_v7 }
 0x47e   :  { %926 = vmatpush.bf16.msrb.mxu3 %v2376_v43  ;;  %939 = vmatpush.bf16.msra.mxu0 %v2417_v10 }
 0x482   :  { %927 = vmatpush.bf16.msrb.mxu3 %v2384_v49  ;;  %940 = vmatpush.bf16.msra.mxu0 %v2422_v13 }
 0x486   :  { %928 = vmatpush.bf16.msrb.mxu3 %v2392_v55  ;;  %941 = vmatpush.bf16.msra.mxu0 %v2426_v17 }
 0x48a   :  { %929 = vmatpush.bf16.msrb.mxu3 %v2400_v61  ;;  %942 = vmatpush.bf16.msra.mxu0 %v2430_v21 }
 0x4ea   :  { %v692_v63 = vpop.f32.mrf.mxu0 }
 0x4eb   :  { %v693_v38 = vadd.f32 %v692_v63, %v2592_v15 }
 0x4f0   :  { %v679_v33 = vpop.f32.mrf.mxu3 }
 0x4f1   :  { %v680_v27 = vadd.f32 %v679_v33, %v2574_v14 }
 0x4f2   :  { %v694_v44 = vpop.f32.mrf.mxu0 }
 0x4f3   :  { %v704_v29 = vadd.f32 %v702_v42, %v680_v27 }
 0x4f5   :  { %v1956_v45 = vmul.f32 -1.442695, %v704_v29 }
 0x4f7   :  { %2066 = vpow2.f32 %v1956_v45 }
 0x4f8   :  { %v681_v48 = vpop.f32.mrf.mxu3 }
 0x4f9   :  { %v742_v48 = vpop.permute.xlu0 %741 }
 0x4fd   :  { %v2067_v50 = vpop.eup %2066 }
 0x4fe   :  { %v708_v51 = vadd.f32 1.0, %v2067_v50 }
 0x500   :  { %2068 = vrcp.f32 %v708_v51  ;;  %v720_v1 = vand.u32 2147483648, %v708_v51  ;;  %v718_v19 = vand.u32 2147483647, %v708_v51  ;;  %vm714_vm15 = vweird.f32 %v708_v51 }
 0x502   :  { %v721_v23 = vor.u32 1.1754944e-38, %v720_v1  ;;  %vm719_vm2 = vcmp.eq.f32.partialorder %v718_v19, 8.507059e+37 }
 0x506   :  { %v2069_v58 = vpop.eup %2068 }
 0x507   :  { %v710_v24 = vmul.f32 %v2069_v58, %v708_v51  ;;  %vm715_vm14 = vweird.f32 %v2069_v58 }
 0x508   :  { %vm716_vm0 = vmor %vm714_vm15, %vm715_vm14 }
 0x509   :  { %v711_v60 = vsub.f32 1.0, %v710_v24 }
 0x50b   :  { %v712_v11 = vmul.f32 %v2069_v58, %v711_v60 }
 0x50d   :  { %v713_v20 = vadd.f32 %v2069_v58, %v712_v11 }
 0x50f   :  { %v717_v31 = vsel %vm716_vm0, %v2069_v58, %v713_v20 }
 0x510   :  { %v722_v5 = vsel %vm719_vm2, %v721_v23, %v717_v31 }
 0x511   :  { %v729_v12 = vmul.f32 %v727_v36, %v722_v5  ;;  %v732_v27 = vsub.f32 1.0, %v722_v5  ;;  %v738_v44 = vmul.f32 %v722_v5, %v2622_v32 }
 0x513   :  { %v730_v33 = vadd.f32 %v729_v12, %v693_v38 }
 0x515   :  { %2070 = vtanh.f32 %v730_v33 }
 0x51b   :  { %v2071_v41 = vpop.eup %2070 }
 0x51c   :  { %734 = vrot.lane.b32.xlu2 %v2071_v41, %s2252_s29 }
 0x576   :  { %v735_v42 = vpop.permute.xlu2 %734 }
 0x577   :  { %v737_v29 = vmul.f32 %v735_v42, %v732_v27 }
 0x579   :  { %v739_v45 = vadd.f32 %v738_v44, %v737_v29 }
 0x57b   :  { %v2690_v50 = vsel %vm184_vm1, %v742_v48, %v739_v45  ;;  %v789_v45 = vld [vmem:[#allocation2 + $0x28] sm:$0xff] }
 0x57c   :  { %821 = vrot.lane.b32.xlu2 %v2690_v50, %s2252_s29  ;;  %v745_v63 = vpack.c.bf16 %v2690_v50, %v2690_v50 }
 0x57e   :  { %754 = vmatmul.bf16.vlgmr.msra.gmra.mxu1 %v745_v63  ;;  %767 = vmatmul.bf16.vlgmr.msra.gmra.mxu3 %v745_v63 }
 0x57f   :  { %780 = vmatmul.bf16.vlgmr.msrb.gmra.mxu0 %v745_v63  ;;  %1000 = vmatpush.bf16.msra.mxu1 %v2480_v26 }
 0x580   :  { %1085 = vmatpush.bf16.msra.mxu3 %v2339_v16  ;;  %1098 = vmatpush.bf16.msrb.mxu0 %v2394_v57 }
 0x583   :  { %1001 = vmatpush.bf16.msra.mxu1 %v2486_v28 }
 0x584   :  { %1086 = vmatpush.bf16.msra.mxu3 %v2346_v22  ;;  %1099 = vmatpush.bf16.msrb.mxu0 %v2403_v62 }
 0x587   :  { %1002 = vmatpush.bf16.msra.mxu1 %v2496_v35 }
 0x588   :  { %1087 = vmatpush.bf16.msra.mxu3 %v2360_v30  ;;  %1100 = vmatpush.bf16.msrb.mxu0 %v2409_v2 }
 0x58b   :  { %1003 = vmatpush.bf16.msra.mxu1 %v2506_v39 }
 0x58c   :  { %1088 = vmatpush.bf16.msra.mxu3 %v2367_v37  ;;  %1101 = vmatpush.bf16.msrb.mxu0 %v2413_v7 }
 0x590   :  { %1089 = vmatpush.bf16.msra.mxu3 %v2376_v43  ;;  %1102 = vmatpush.bf16.msrb.mxu0 %v2417_v10 }
 0x594   :  { %1090 = vmatpush.bf16.msra.mxu3 %v2384_v49  ;;  %1103 = vmatpush.bf16.msrb.mxu0 %v2422_v13 }
 0x598   :  { %1091 = vmatpush.bf16.msra.mxu3 %v2392_v55  ;;  %1104 = vmatpush.bf16.msrb.mxu0 %v2426_v17 }
 0x59c   :  { %1092 = vmatpush.bf16.msra.mxu3 %v2400_v61  ;;  %1105 = vmatpush.bf16.msrb.mxu0 %v2430_v21 }
 0x5fb   :  { %v755_v32 = vpop.f32.mrf.mxu1 }
 0x5fc   :  { %v790_v51 = vadd.f32 %v755_v32, %v2607_v47  ;;  %v781_v58 = vpop.f32.mrf.mxu0 }
 0x5fd   :  { %863 = vrot.lane.b32.xlu2 %v781_v58, %s2252_s29 }
 0x5fe   :  { %v1957_v24 = vmul.f32 -1.442695, %v790_v51  ;;  %v822_v51 = vpop.permute.xlu2 %821 }
 0x600   :  { %2072 = vpow2.f32 %v1957_v24 }
 0x601   :  { %v768_v60 = vpop.f32.mrf.mxu3 }
 0x602   :  { %v810_v42 = vadd.f32 %v2466_v56, %v768_v60 }
 0x603   :  { %v757_v1 = vpop.f32.mrf.mxu1 }
 0x604   :  { %v783_v11 = vpop.f32.mrf.mxu0 }
 0x606   :  { %v2073_v19 = vpop.eup %2072 }
 0x607   :  { %v794_v20 = vadd.f32 1.0, %v2073_v19 }
 0x609   :  { %2074 = vrcp.f32 %v794_v20  ;;  %v770_v23 = vpop.f32.mrf.mxu3  ;;  %v806_v38 = vand.u32 2147483648, %v794_v20  ;;  %v804_v33 = vand.u32 2147483647, %v794_v20  ;;  %vm800_vm4 = vweird.f32 %v794_v20 }
 0x60a   :  { %v887_v23 = vadd.f32 %v781_v58, %v2553_v9 }
 0x60b   :  { %v807_v41 = vor.u32 1.1754944e-38, %v806_v38  ;;  %vm805_vm6 = vcmp.eq.f32.partialorder %v804_v33, 8.507059e+37 }
 0x60f   :  { %v2075_v31 = vpop.eup %2074 }
 0x610   :  { %v796_v36 = vmul.f32 %v2075_v31, %v794_v20  ;;  %vm801_vm3 = vweird.f32 %v2075_v31 }
 0x611   :  { %vm802_vm5 = vmor %vm800_vm4, %vm801_vm3 }
 0x612   :  { %v797_v5 = vsub.f32 1.0, %v796_v36 }
 0x614   :  { %v798_v12 = vmul.f32 %v2075_v31, %v797_v5 }
 0x616   :  { %v799_v47 = vadd.f32 %v2075_v31, %v798_v12 }
 0x618   :  { %v803_v27 = vsel %vm802_vm5, %v2075_v31, %v799_v47 }
 0x619   :  { %v808_v44 = vsel %vm805_vm6, %v807_v41, %v803_v27 }
 0x61a   :  { %v811_v29 = vmul.f32 %v810_v42, %v808_v44  ;;  %v814_v32 = vsub.f32 1.0, %v808_v44  ;;  %v824_v11 = vmul.f32 %v822_v51, %v808_v44 }
 0x61c   :  { %v812_v48 = vadd.f32 %v811_v29, %v789_v45 }
 0x61e   :  { %2076 = vtanh.f32 %v812_v48 }
 0x624   :  { %v2077_v63 = vpop.eup %2076 }
 0x625   :  { %816 = vrot.lane.b32.xlu1 %v2077_v63, %s2252_s29 }
 0x62d   :  { %861 = vrot.lane.b32.xlu1 %v768_v60, %s2252_s29 }
 0x657   :  { %v864_v5 = vpop.permute.xlu2 %863 }
 0x697   :  { %v817_v24 = vpop.permute.xlu1 %816 }
 0x698   :  { %v819_v1 = vmul.f32 %v817_v24, %v814_v32 }
 0x69a   :  { %v825_v19 = vadd.f32 %v824_v11, %v819_v1 }
 0x69c   :  { %904 = vrot.lane.b32.xlu2 %v825_v19, %s2252_s29  ;;  %v826_v20 = vpack.c.bf16 %v825_v19, %v825_v19 }
 0x69e   :  { %828 = vrot.lane.b32.xlu0 %v826_v20, %s2252_s29 }
 0x69f   :  { %v862_v60 = vpop.permute.xlu1 %861 }
 0x6a0   :  { %v865_v12 = vsel %vm184_vm1, %v862_v60, %v864_v5 }
 0x6a6   :  { %889 = vrot.lane.b32.xlu0 %v887_v23, %s2252_s29 }
 0x710   :  { %v829_v31 = vpop.permute.xlu0 %828 }
 0x711   :  { %1958 = vmatmul.msk.bf16.vlgmr.msrb.gmra.mxu2 %vm184_vm1, %v829_v31  ;;  %1959 = vmatmul.msk.bf16.vlgmr.msrb.gmra.mxu1 %vm184_vm1, %v829_v31 }
 0x712   :  { %1013 = vmatpush.bf16.msrb.mxu1 %v2519_v52  ;;  %1072 = vmatpush.bf16.msrb.mxu2 %v2322_v3 }
 0x716   :  { %1014 = vmatpush.bf16.msrb.mxu1 %v2528_v59  ;;  %1073 = vmatpush.bf16.msrb.mxu2 %v2328_v6 }
 0x718   :  { %v890_v19 = vpop.permute.xlu0 %889 }
 0x71a   :  { %1015 = vmatpush.bf16.msrb.mxu1 %v2538_v0  ;;  %1074 = vmatpush.bf16.msrb.mxu2 %v2342_v18 }
 0x71e   :  { %1016 = vmatpush.bf16.msrb.mxu1 %v2548_v8  ;;  %1075 = vmatpush.bf16.msrb.mxu2 %v2350_v25 }
 0x722   :  { %1076 = vmatpush.bf16.msrb.mxu2 %v2363_v34 }
 0x726   :  { %1077 = vmatpush.bf16.msrb.mxu2 %v2372_v40 }
 0x72a   :  { %1078 = vmatpush.bf16.msrb.mxu2 %v2380_v46 }
 0x72e   :  { %1079 = vmatpush.bf16.msrb.mxu2 %v2388_v54 }
 0x78e   :  { %v855_v58 = vpop.f32.mrf.mxu1 }
 0x78f   :  { %v856_v23 = vadd.f32 %v855_v58, %v2592_v15 }
 0x794   :  { %v842_v36 = vpop.f32.mrf.mxu2 }
 0x795   :  { %v843_v38 = vadd.f32 %v842_v36, %v2574_v14 }
 0x796   :  { %v857_v33 = vpop.f32.mrf.mxu1 }
 0x797   :  { %v867_v47 = vadd.f32 %v865_v12, %v843_v38 }
 0x799   :  { %v1960_v41 = vmul.f32 -1.442695, %v867_v47 }
 0x79b   :  { %2078 = vpow2.f32 %v1960_v41  ;;  %v905_v41 = vpop.permute.xlu2 %904 }
 0x79c   :  { %v844_v27 = vpop.f32.mrf.mxu2 }
 0x7a1   :  { %v2079_v42 = vpop.eup %2078 }
 0x7a2   :  { %v871_v44 = vadd.f32 1.0, %v2079_v42 }
 0x7a4   :  { %2080 = vrcp.f32 %v871_v44  ;;  %v883_v63 = vand.u32 2147483648, %v871_v44  ;;  %v881_v51 = vand.u32 2147483647, %v871_v44  ;;  %vm877_vm8 = vweird.f32 %v871_v44 }
 0x7a6   :  { %v884_v1 = vor.u32 1.1754944e-38, %v883_v63  ;;  %vm882_vm10 = vcmp.eq.f32.partialorder %v881_v51, 8.507059e+37 }
 0x7aa   :  { %v2081_v29 = vpop.eup %2080 }
 0x7ab   :  { %v873_v45 = vmul.f32 %v2081_v29, %v871_v44  ;;  %vm878_vm7 = vweird.f32 %v2081_v29 }
 0x7ac   :  { %vm879_vm9 = vmor %vm877_vm8, %vm878_vm7 }
 0x7ad   :  { %v874_v48 = vsub.f32 1.0, %v873_v45 }
 0x7af   :  { %v875_v32 = vmul.f32 %v2081_v29, %v874_v48 }
 0x7b1   :  { %v876_v24 = vadd.f32 %v2081_v29, %v875_v32 }
 0x7b3   :  { %v880_v11 = vsel %vm879_vm9, %v2081_v29, %v876_v24 }
 0x7b4   :  { %v885_v20 = vsel %vm882_vm10, %v884_v1, %v880_v11 }
 0x7b5   :  { %v892_v31 = vmul.f32 %v890_v19, %v885_v20  ;;  %v895_v5 = vsub.f32 1.0, %v885_v20  ;;  %v901_v12 = vmul.f32 %v885_v20, %v2690_v50 }
 0x7b7   :  { %v893_v60 = vadd.f32 %v892_v31, %v856_v23 }
 0x7b9   :  { %2082 = vtanh.f32 %v893_v60 }
 0x7bf   :  { %v2083_v36 = vpop.eup %2082 }
 0x7c0   :  { %897 = vrot.lane.b32.xlu1 %v2083_v36, %s2252_s29 }
 0x832   :  { %v898_v38 = vpop.permute.xlu1 %897 }
 0x833   :  { %v900_v33 = vmul.f32 %v898_v38, %v895_v5 }
 0x835   :  { %v902_v47 = vadd.f32 %v901_v12, %v900_v33  ;;  %v952_v33 = vld [vmem:[#allocation2 + $0x38] sm:$0xff] }
 0x837   :  { %v2745_v27 = vsel %vm184_vm1, %v905_v41, %v902_v47 }
 0x838   :  { %984 = vrot.lane.b32.xlu1 %v2745_v27, %s2252_s29  ;;  %v908_v58 = vpack.c.bf16 %v2745_v27, %v2745_v27 }
 0x83a   :  { %917 = vmatmul.bf16.vlgmr.msra.gmra.mxu2 %v908_v58  ;;  %930 = vmatmul.bf16.vlgmr.msrb.gmra.mxu3 %v908_v58 }
 0x83b   :  { %943 = vmatmul.bf16.vlgmr.msra.gmra.mxu0 %v908_v58  ;;  %1235 = vmatpush.bf16.msra.mxu2 %v2322_v3 }
 0x83c   :  { %1248 = vmatpush.bf16.msrb.mxu3 %v2339_v16  ;;  %1261 = vmatpush.bf16.msra.mxu0 %v2394_v57 }
 0x83f   :  { %1236 = vmatpush.bf16.msra.mxu2 %v2328_v6 }
 0x840   :  { %1249 = vmatpush.bf16.msrb.mxu3 %v2346_v22  ;;  %1262 = vmatpush.bf16.msra.mxu0 %v2403_v62 }
 0x843   :  { %1237 = vmatpush.bf16.msra.mxu2 %v2342_v18 }
 0x844   :  { %1250 = vmatpush.bf16.msrb.mxu3 %v2360_v30  ;;  %1263 = vmatpush.bf16.msra.mxu0 %v2409_v2 }
 0x847   :  { %1238 = vmatpush.bf16.msra.mxu2 %v2350_v25 }
 0x848   :  { %1251 = vmatpush.bf16.msrb.mxu3 %v2367_v37  ;;  %1264 = vmatpush.bf16.msra.mxu0 %v2413_v7 }
 0x84b   :  { %1239 = vmatpush.bf16.msra.mxu2 %v2363_v34 }
 0x84c   :  { %1252 = vmatpush.bf16.msrb.mxu3 %v2376_v43  ;;  %1265 = vmatpush.bf16.msra.mxu0 %v2417_v10 }
 0x84f   :  { %1240 = vmatpush.bf16.msra.mxu2 %v2372_v40 }
 0x850   :  { %1253 = vmatpush.bf16.msrb.mxu3 %v2384_v49  ;;  %1266 = vmatpush.bf16.msra.mxu0 %v2422_v13 }
 0x853   :  { %1241 = vmatpush.bf16.msra.mxu2 %v2380_v46 }
 0x854   :  { %1254 = vmatpush.bf16.msrb.mxu3 %v2392_v55  ;;  %1267 = vmatpush.bf16.msra.mxu0 %v2426_v17 }
 0x857   :  { %1242 = vmatpush.bf16.msra.mxu2 %v2388_v54 }
 0x858   :  { %1255 = vmatpush.bf16.msrb.mxu3 %v2400_v61  ;;  %1268 = vmatpush.bf16.msra.mxu0 %v2430_v21 }
 0x8b8   :  { %v944_v50 = vpop.f32.mrf.mxu0 }
 0x8b9   :  { %1026 = vrot.lane.b32.xlu1 %v944_v50, %s2252_s29 }
 0x8bd   :  { %v918_v42 = vpop.f32.mrf.mxu2  ;;  %v931_v44 = vpop.f32.mrf.mxu3 }
 0x8be   :  { %v953_v29 = vadd.f32 %v918_v42, %v2612_v53  ;;  %v973_v5 = vadd.f32 %v2466_v56, %v931_v44  ;;  %v985_v42 = vpop.permute.xlu1 %984  ;;  %v1050_v56 = vadd.f32 %v944_v50, %v2553_v9 }
 0x8c0   :  { %v1961_v45 = vmul.f32 -1.442695, %v953_v29  ;;  %v946_v48 = vpop.f32.mrf.mxu0 }
 0x8c2   :  { %2084 = vpow2.f32 %v1961_v45 }
 0x8c5   :  { %v920_v63 = vpop.f32.mrf.mxu2  ;;  %v933_v32 = vpop.f32.mrf.mxu3 }
 0x8c8   :  { %v2085_v51 = vpop.eup %2084 }
 0x8c9   :  { %v957_v24 = vadd.f32 1.0, %v2085_v51 }
 0x8cb   :  { %2086 = vrcp.f32 %v957_v24  ;;  %v969_v20 = vand.u32 2147483648, %v957_v24  ;;  %v967_v31 = vand.u32 2147483647, %v957_v24  ;;  %vm963_vm12 = vweird.f32 %v957_v24 }
 0x8cd   :  { %v970_v36 = vor.u32 1.1754944e-38, %v969_v20  ;;  %vm968_vm14 = vcmp.eq.f32.partialorder %v967_v31, 8.507059e+37 }
 0x8d1   :  { %v2087_v1 = vpop.eup %2086 }
 0x8d2   :  { %v959_v11 = vmul.f32 %v2087_v1, %v957_v24  ;;  %vm964_vm11 = vweird.f32 %v2087_v1 }
 0x8d3   :  { %vm965_vm13 = vmor %vm963_vm12, %vm964_vm11 }
 0x8d4   :  { %v960_v19 = vsub.f32 1.0, %v959_v11 }
 0x8d6   :  { %v961_v23 = vmul.f32 %v2087_v1, %v960_v19 }
 0x8d8   :  { %v962_v60 = vadd.f32 %v2087_v1, %v961_v23 }
 0x8da   :  { %v966_v53 = vsel %vm965_vm13, %v2087_v1, %v962_v60 }
 0x8db   :  { %v971_v38 = vsel %vm968_vm14, %v970_v36, %v966_v53 }
 0x8dc   :  { %v974_v12 = vmul.f32 %v973_v5, %v971_v38  ;;  %v977_v58 = vsub.f32 1.0, %v971_v38  ;;  %v987_v48 = vmul.f32 %v985_v42, %v971_v38 }
 0x8de   :  { %v975_v47 = vadd.f32 %v974_v12, %v952_v33 }
 0x8e0   :  { %2088 = vtanh.f32 %v975_v47 }
 0x8e6   :  { %v2089_v41 = vpop.eup %2088 }
 0x8e7   :  { %979 = vrot.lane.b32.xlu0 %v2089_v41, %s2252_s29 }
 0x8ef   :  { %1024 = vrot.lane.b32.xlu0 %v931_v44, %s2252_s29 }
 0x92b   :  { %v1027_v24 = vpop.permute.xlu1 %1026 }
 0x959   :  { %v980_v29 = vpop.permute.xlu0 %979 }
 0x95a   :  { %v982_v45 = vmul.f32 %v980_v29, %v977_v58 }
 0x95c   :  { %v988_v63 = vadd.f32 %v987_v48, %v982_v45 }
 0x95e   :  { %1067 = vrot.lane.b32.xlu1 %v988_v63, %s2252_s29  ;;  %v989_v32 = vpack.c.bf16 %v988_v63, %v988_v63 }
 0x960   :  { %991 = vrot.lane.b32.xlu2 %v989_v32, %s2252_s29 }
 0x961   :  { %v1025_v50 = vpop.permute.xlu0 %1024 }
 0x962   :  { %v1028_v11 = vsel %vm184_vm1, %v1025_v50, %v1027_v24 }
 0x968   :  { %1052 = vrot.lane.b32.xlu2 %v1050_v56, %s2252_s29 }
 0x9ba   :  { %v992_v51 = vpop.permute.xlu2 %991 }
 0x9bb   :  { %1962 = vmatmul.msk.bf16.vlgmr.msra.gmra.mxu1 %vm184_vm1, %v992_v51 }
 0x9bc   :  { %1163 = vmatpush.bf16.msra.mxu1 %v2480_v26 }
 0x9c0   :  { %1164 = vmatpush.bf16.msra.mxu1 %v2486_v28 }
 0x9c2   :  { %v1053_v45 = vpop.permute.xlu2 %1052 }
 0x9c4   :  { %1165 = vmatpush.bf16.msra.mxu1 %v2496_v35 }
 0x9c8   :  { %1166 = vmatpush.bf16.msra.mxu1 %v2506_v39 }
 0x9cb   :  { %1963 = vmatmul.msk.bf16.vlgmr.msrb.gmra.mxu1 %vm184_vm1, %v992_v51 }
 0x9cc   :  { %1176 = vmatpush.bf16.msrb.mxu1 %v2519_v52 }
 0x9d0   :  { %1177 = vmatpush.bf16.msrb.mxu1 %v2528_v59 }
 0x9d4   :  { %1178 = vmatpush.bf16.msrb.mxu1 %v2538_v0 }
 0x9d8   :  { %1179 = vmatpush.bf16.msrb.mxu1 %v2548_v8 }
 0xa38   :  { %v1005_v44 = vpop.f32.mrf.mxu1 }
 0xa39   :  { %v1006_v1 = vadd.f32 %v1005_v44, %v2574_v14 }
 0xa3b   :  { %v1030_v19 = vadd.f32 %v1028_v11, %v1006_v1 }
 0xa3d   :  { %v1964_v20 = vmul.f32 -1.442695, %v1030_v19  ;;  %v1068_v19 = vpop.permute.xlu1 %1067 }
 0xa3f   :  { %2090 = vpow2.f32 %v1964_v20 }
 0xa40   :  { %v1007_v23 = vpop.f32.mrf.mxu1 }
 0xa45   :  { %v2091_v31 = vpop.eup %2090 }
 0xa46   :  { %v1034_v60 = vadd.f32 1.0, %v2091_v31 }
 0xa48   :  { %2092 = vrcp.f32 %v1034_v60  ;;  %v1018_v36 = vpop.f32.mrf.mxu1  ;;  %v1046_v33 = vand.u32 2147483648, %v1034_v60  ;;  %v1044_v41 = vand.u32 2147483647, %v1034_v60  ;;  %vm1040_vm0 = vweird.f32 %v1034_v60 }
 0xa49   :  { %v1019_v63 = vadd.f32 %v1018_v36, %v2592_v15 }
 0xa4a   :  { %v1047_v42 = vor.u32 1.1754944e-38, %v1046_v33  ;;  %vm1045_vm3 = vcmp.eq.f32.partialorder %v1044_v41, 8.507059e+37 }
 0xa4e   :  { %v2093_v53 = vpop.eup %2092 }
 0xa4f   :  { %v1036_v5 = vmul.f32 %v2093_v53, %v1034_v60  ;;  %vm1041_vm15 = vweird.f32 %v2093_v53 }
 0xa50   :  { %v1020_v38 = vpop.f32.mrf.mxu1  ;;  %vm1042_vm2 = vmor %vm1040_vm0, %vm1041_vm15 }
 0xa51   :  { %v1037_v12 = vsub.f32 1.0, %v1036_v5 }
 0xa53   :  { %v1038_v47 = vmul.f32 %v2093_v53, %v1037_v12 }
 0xa55   :  { %v1039_v58 = vadd.f32 %v2093_v53, %v1038_v47 }
 0xa57   :  { %v1043_v29 = vsel %vm1042_vm2, %v2093_v53, %v1039_v58 }
 0xa58   :  { %v1048_v48 = vsel %vm1045_vm3, %v1047_v42, %v1043_v29 }
 0xa59   :  { %v1055_v32 = vmul.f32 %v1053_v45, %v1048_v48  ;;  %v1058_v50 = vsub.f32 1.0, %v1048_v48  ;;  %v1064_v24 = vmul.f32 %v1048_v48, %v2745_v27 }
 0xa5b   :  { %v1056_v56 = vadd.f32 %v1055_v32, %v1019_v63 }
 0xa5d   :  { %2094 = vtanh.f32 %v1056_v56  ;;  %v2832_v56 = vld [vmem:[#allocation6] ss:$0 sm:$0xff] }
 0xa63   :  { %v2095_v51 = vpop.eup %2094 }
 0xa64   :  { %1060 = vrot.lane.b32.xlu0 %v2095_v51, %s2252_s29 }
 0xad6   :  { %v1061_v44 = vpop.permute.xlu0 %1060 }
 0xad7   :  { %v1063_v1 = vmul.f32 %v1061_v44, %v1058_v50 }
 0xad9   :  { %v1065_v11 = vadd.f32 %v1064_v24, %v1063_v1  ;;  %v1115_v24 = vld [vmem:[#allocation2 + $0x48] sm:$0xff] }
 0xadb   :  { %v2800_v20 = vsel %vm184_vm1, %v1068_v19, %v1065_v11 }
 0xadc   :  { %1147 = vrot.lane.b32.xlu0 %v2800_v20, %s2252_s29  ;;  %v1071_v23 = vpack.c.bf16 %v2800_v20, %v2800_v20 }
 0xade   :  { %1080 = vmatmul.bf16.vlgmr.msrb.gmra.mxu2 %v1071_v23  ;;  %1093 = vmatmul.bf16.vlgmr.msra.gmra.mxu3 %v1071_v23 }
 0xadf   :  { %1106 = vmatmul.bf16.vlgmr.msrb.gmra.mxu0 %v1071_v23  ;;  %1398 = vmatpush.bf16.msrb.mxu2 %v2322_v3 }
 0xae0   :  { %1411 = vmatpush.bf16.msra.mxu3 %v2339_v16  ;;  %1424 = vmatpush.bf16.msrb.mxu0 %v2394_v57 }
 0xae3   :  { %1399 = vmatpush.bf16.msrb.mxu2 %v2328_v6 }
 0xae4   :  { %1412 = vmatpush.bf16.msra.mxu3 %v2346_v22  ;;  %1425 = vmatpush.bf16.msrb.mxu0 %v2403_v62 }
 0xae7   :  { %1400 = vmatpush.bf16.msrb.mxu2 %v2342_v18 }
 0xae8   :  { %1413 = vmatpush.bf16.msra.mxu3 %v2360_v30  ;;  %1426 = vmatpush.bf16.msrb.mxu0 %v2409_v2 }
 0xaeb   :  { %1401 = vmatpush.bf16.msrb.mxu2 %v2350_v25 }
 0xaec   :  { %1414 = vmatpush.bf16.msra.mxu3 %v2367_v37  ;;  %1427 = vmatpush.bf16.msrb.mxu0 %v2413_v7 }
 0xaef   :  { %1402 = vmatpush.bf16.msrb.mxu2 %v2363_v34 }
 0xaf0   :  { %1415 = vmatpush.bf16.msra.mxu3 %v2376_v43  ;;  %1428 = vmatpush.bf16.msrb.mxu0 %v2417_v10 }
 0xaf3   :  { %1403 = vmatpush.bf16.msrb.mxu2 %v2372_v40 }
 0xaf4   :  { %1416 = vmatpush.bf16.msra.mxu3 %v2384_v49  ;;  %1429 = vmatpush.bf16.msrb.mxu0 %v2422_v13 }
 0xaf7   :  { %1404 = vmatpush.bf16.msrb.mxu2 %v2380_v46 }
 0xaf8   :  { %1417 = vmatpush.bf16.msra.mxu3 %v2392_v55  ;;  %1430 = vmatpush.bf16.msrb.mxu0 %v2426_v17 }
 0xafb   :  { %1405 = vmatpush.bf16.msrb.mxu2 %v2388_v54 }
 0xafc   :  { %1418 = vmatpush.bf16.msra.mxu3 %v2400_v61  ;;  %1431 = vmatpush.bf16.msrb.mxu0 %v2430_v21 }
 0xb4e   :  { %v1148_v23 = vpop.permute.xlu0 %1147 }
 0xb5c   :  { %v1107_v27 = vpop.f32.mrf.mxu0 }
 0xb5d   :  { %1189 = vrot.lane.b32.xlu0 %v1107_v27, %s2252_s29 }
 0xb61   :  { %v1081_v31 = vpop.f32.mrf.mxu2  ;;  %v1094_v60 = vpop.f32.mrf.mxu3 }
 0xb62   :  { %v1116_v36 = vadd.f32 %v1081_v31, %v2617_v4  ;;  %v1136_v51 = vadd.f32 %v2832_v56, %v1094_v60 }
 0xb64   :  { %v1965_v53 = vmul.f32 -1.442695, %v1116_v36  ;;  %v1109_v5 = vpop.f32.mrf.mxu0 }
 0xb66   :  { %2096 = vpow2.f32 %v1965_v53 }
 0xb69   :  { %v1083_v38 = vpop.f32.mrf.mxu2  ;;  %v1096_v12 = vpop.f32.mrf.mxu3 }
 0xb6a   :  { %v1213_v12 = vadd.f32 %v1107_v27, %v2553_v9 }
 0xb6c   :  { %v2097_v33 = vpop.eup %2096 }
 0xb6d   :  { %v1120_v47 = vadd.f32 1.0, %v2097_v33 }
 0xb6f   :  { %2098 = vrcp.f32 %v1120_v47  ;;  %v1132_v29 = vand.u32 2147483648, %v1120_v47  ;;  %v1130_v48 = vand.u32 2147483647, %v1120_v47  ;;  %vm1126_vm5 = vweird.f32 %v1120_v47 }
 0xb71   :  { %v1133_v32 = vor.u32 1.1754944e-38, %v1132_v29  ;;  %vm1131_vm7 = vcmp.eq.f32.partialorder %v1130_v48, 8.507059e+37 }
 0xb75   :  { %v2099_v41 = vpop.eup %2098 }
 0xb76   :  { %v1122_v58 = vmul.f32 %v2099_v41, %v1120_v47  ;;  %vm1127_vm4 = vweird.f32 %v2099_v41 }
 0xb77   :  { %vm1128_vm6 = vmor %vm1126_vm5, %vm1127_vm4 }
 0xb78   :  { %v1123_v42 = vsub.f32 1.0, %v1122_v58 }
 0xb7a   :  { %v1124_v45 = vmul.f32 %v2099_v41, %v1123_v42 }
 0xb7c   :  { %v1125_v63 = vadd.f32 %v2099_v41, %v1124_v45 }
 0xb7e   :  { %v1129_v4 = vsel %vm1128_vm6, %v2099_v41, %v1125_v63 }
 0xb7f   :  { %v1134_v50 = vsel %vm1131_vm7, %v1133_v32, %v1129_v4 }
 0xb80   :  { %v1137_v44 = vmul.f32 %v1136_v51, %v1134_v50  ;;  %v1140_v19 = vsub.f32 1.0, %v1134_v50  ;;  %v1150_v53 = vmul.f32 %v1148_v23, %v1134_v50 }
 0xb82   :  { %v1138_v1 = vadd.f32 %v1137_v44, %v1115_v24 }
 0xb84   :  { %2100 = vtanh.f32 %v1138_v1 }
 0xb8a   :  { %v2101_v11 = vpop.eup %2100 }
 0xb8b   :  { %1142 = vrot.lane.b32.xlu2 %v2101_v11, %s2252_s29 }
 0xb93   :  { %1187 = vrot.lane.b32.xlu2 %v1094_v60, %s2252_s29 }
 0xbcf   :  { %v1190_v47 = vpop.permute.xlu0 %1189 }
 0xbe5   :  { %v1143_v31 = vpop.permute.xlu2 %1142 }
 0xbe6   :  { %v1145_v36 = vmul.f32 %v1143_v31, %v1140_v19 }
 0xbe8   :  { %v1151_v5 = vadd.f32 %v1150_v53, %v1145_v36 }
 0xbea   :  { %1230 = vrot.lane.b32.xlu0 %v1151_v5, %s2252_s29  ;;  %v1152_v38 = vpack.c.bf16 %v1151_v5, %v1151_v5 }
 0xbec   :  { %1154 = vrot.lane.b32.xlu1 %v1152_v38, %s2252_s29 }
 0xbed   :  { %v1188_v27 = vpop.permute.xlu2 %1187 }
 0xbee   :  { %v1191_v58 = vsel %vm184_vm1, %v1188_v27, %v1190_v47 }
 0xbf4   :  { %1215 = vrot.lane.b32.xlu1 %v1213_v12, %s2252_s29 }
 0xc5e   :  { %v1155_v33 = vpop.permute.xlu1 %1154 }
 0xc5f   :  { %1966 = vmatmul.msk.bf16.vlgmr.msra.gmra.mxu1 %vm184_vm1, %v1155_v33 }
 0xc60   :  { %1326 = vmatpush.bf16.msra.mxu1 %v2480_v26 }
 0xc64   :  { %1327 = vmatpush.bf16.msra.mxu1 %v2486_v28 }
 0xc66   :  { %v1216_v36 = vpop.permute.xlu1 %1215 }
 0xc68   :  { %1328 = vmatpush.bf16.msra.mxu1 %v2496_v35 }
 0xc6c   :  { %1329 = vmatpush.bf16.msra.mxu1 %v2506_v39 }
 0xc6f   :  { %1967 = vmatmul.msk.bf16.vlgmr.msrb.gmra.mxu1 %vm184_vm1, %v1155_v33 }
 0xc70   :  { %1339 = vmatpush.bf16.msrb.mxu1 %v2519_v52 }
 0xc74   :  { %1340 = vmatpush.bf16.msrb.mxu1 %v2528_v59 }
 0xc78   :  { %1341 = vmatpush.bf16.msrb.mxu1 %v2538_v0 }
 0xc7c   :  { %1342 = vmatpush.bf16.msrb.mxu1 %v2548_v8 }
 0xcdc   :  { %v1168_v60 = vpop.f32.mrf.mxu1 }
 0xcdd   :  { %v1169_v41 = vadd.f32 %v1168_v60, %v2574_v14 }
 0xcdf   :  { %v1193_v42 = vadd.f32 %v1191_v58, %v1169_v41 }
 0xce1   :  { %v1968_v29 = vmul.f32 -1.442695, %v1193_v42  ;;  %v1231_v42 = vpop.permute.xlu0 %1230 }
 0xce3   :  { %2102 = vpow2.f32 %v1968_v29 }
 0xce4   :  { %v1170_v45 = vpop.f32.mrf.mxu1 }
 0xce9   :  { %v2103_v48 = vpop.eup %2102 }
 0xcea   :  { %v1197_v63 = vadd.f32 1.0, %v2103_v48 }
 0xcec   :  { %2104 = vrcp.f32 %v1197_v63  ;;  %v1181_v32 = vpop.f32.mrf.mxu1  ;;  %v1209_v24 = vand.u32 2147483648, %v1197_v63  ;;  %v1207_v11 = vand.u32 2147483647, %v1197_v63  ;;  %vm1203_vm9 = vweird.f32 %v1197_v63 }
 0xced   :  { %v1182_v5 = vadd.f32 %v1181_v32, %v2592_v15 }
 0xcee   :  { %v1210_v23 = vor.u32 1.1754944e-38, %v1209_v24  ;;  %vm1208_vm11 = vcmp.eq.f32.partialorder %v1207_v11, 8.507059e+37 }
 0xcf2   :  { %v2105_v4 = vpop.eup %2104 }
 0xcf3   :  { %v1199_v51 = vmul.f32 %v2105_v4, %v1197_v63  ;;  %vm1204_vm8 = vweird.f32 %v2105_v4 }
 0xcf4   :  { %v1183_v50 = vpop.f32.mrf.mxu1  ;;  %vm1205_vm10 = vmor %vm1203_vm9, %vm1204_vm8 }
 0xcf5   :  { %v1200_v44 = vsub.f32 1.0, %v1199_v51 }
 0xcf7   :  { %v1201_v1 = vmul.f32 %v2105_v4, %v1200_v44 }
 0xcf9   :  { %v1202_v19 = vadd.f32 %v2105_v4, %v1201_v1 }
 0xcfb   :  { %v1206_v31 = vsel %vm1205_vm10, %v2105_v4, %v1202_v19 }
 0xcfc   :  { %v1211_v53 = vsel %vm1208_vm11, %v1210_v23, %v1206_v31 }
 0xcfd   :  { %v1218_v38 = vmul.f32 %v1216_v36, %v1211_v53  ;;  %v1221_v27 = vsub.f32 1.0, %v1211_v53  ;;  %v1227_v47 = vmul.f32 %v1211_v53, %v2800_v20 }
 0xcff   :  { %v1219_v12 = vadd.f32 %v1218_v38, %v1182_v5 }
 0xd01   :  { %2106 = vtanh.f32 %v1219_v12 }
 0xd07   :  { %v2107_v33 = vpop.eup %2106 }
 0xd08   :  { %1223 = vrot.lane.b32.xlu2 %v2107_v33, %s2252_s29 }
 0xd62   :  { %v1224_v60 = vpop.permute.xlu2 %1223 }
 0xd63   :  { %v1226_v41 = vmul.f32 %v1224_v60, %v1221_v27 }
 0xd65   :  { %v1228_v58 = vadd.f32 %v1227_v47, %v1226_v41 }
 0xd67   :  { %v2857_v29 = vsel %vm184_vm1, %v1231_v42, %v1228_v58 }
 0xd68   :  { %1310 = vrot.lane.b32.xlu2 %v2857_v29, %s2252_s29  ;;  %v1234_v45 = vpack.c.bf16 %v2857_v29, %v2857_v29 }
 0xd6a   :  { %1243 = vmatmul.bf16.vlgmr.msra.gmra.mxu2 %v1234_v45  ;;  %1256 = vmatmul.bf16.vlgmr.msrb.gmra.mxu3 %v1234_v45 }
 0xd6b   :  { %1269 = vmatmul.bf16.vlgmr.msra.gmra.mxu0 %v1234_v45  ;;  %1561 = vmatpush.bf16.msra.mxu2 %v2322_v3 }
 0xd6c   :  { %1574 = vmatpush.bf16.msrb.mxu3 %v2339_v16  ;;  %1587 = vmatpush.bf16.msra.mxu0 %v2394_v57  ;;  %v1277_v16 = vld [vmem:[#allocation2 + $0x50] sm:$0xff] }
 0xd6f   :  { %1562 = vmatpush.bf16.msra.mxu2 %v2328_v6 }
 0xd70   :  { %1575 = vmatpush.bf16.msrb.mxu3 %v2346_v22  ;;  %1588 = vmatpush.bf16.msra.mxu0 %v2403_v62 }
 0xd73   :  { %1563 = vmatpush.bf16.msra.mxu2 %v2342_v18 }
 0xd74   :  { %1576 = vmatpush.bf16.msrb.mxu3 %v2360_v30  ;;  %1589 = vmatpush.bf16.msra.mxu0 %v2409_v2 }
 0xd77   :  { %1564 = vmatpush.bf16.msra.mxu2 %v2350_v25 }
 0xd78   :  { %1577 = vmatpush.bf16.msrb.mxu3 %v2367_v37  ;;  %1590 = vmatpush.bf16.msra.mxu0 %v2413_v7 }
 0xd7b   :  { %1565 = vmatpush.bf16.msra.mxu2 %v2363_v34 }
 0xd7c   :  { %1578 = vmatpush.bf16.msrb.mxu3 %v2376_v43  ;;  %1591 = vmatpush.bf16.msra.mxu0 %v2417_v10 }
 0xd7f   :  { %1566 = vmatpush.bf16.msra.mxu2 %v2372_v40 }
 0xd80   :  { %1579 = vmatpush.bf16.msrb.mxu3 %v2384_v49  ;;  %1592 = vmatpush.bf16.msra.mxu0 %v2422_v13 }
 0xd83   :  { %1567 = vmatpush.bf16.msra.mxu2 %v2380_v46 }
 0xd84   :  { %1580 = vmatpush.bf16.msrb.mxu3 %v2392_v55  ;;  %1593 = vmatpush.bf16.msra.mxu0 %v2426_v17 }
 0xd87   :  { %1568 = vmatpush.bf16.msra.mxu2 %v2388_v54 }
 0xd88   :  { %1581 = vmatpush.bf16.msrb.mxu3 %v2400_v61  ;;  %1594 = vmatpush.bf16.msra.mxu0 %v2430_v21  ;;  %v1278_v21 = vld [vmem:[#allocation2 + $0x58] sm:$0xff] }
 0xdc2   :  { %v1311_v32 = vpop.permute.xlu2 %1310 }
 0xde8   :  { %v1270_v3 = vpop.f32.mrf.mxu0 }
 0xde9   :  { %1352 = vrot.lane.b32.xlu2 %v1270_v3, %s2252_s29  ;;  %v1376_v1 = vadd.f32 %v1270_v3, %v2553_v9 }
 0xded   :  { %v1244_v6 = vpop.f32.mrf.mxu2  ;;  %v1257_v18 = vpop.f32.mrf.mxu3 }
 0xdee   :  { %v1279_v22 = vadd.f32 %v1277_v16, %v1244_v6  ;;  %v1299_v10 = vadd.f32 %v2832_v56, %v1257_v18 }
 0xdf0   :  { %v1969_v25 = vmul.f32 -1.442695, %v1279_v22  ;;  %v1272_v30 = vpop.f32.mrf.mxu0 }
 0xdf2   :  { %2108 = vpow2.f32 %v1969_v25 }
 0xdf5   :  { %v1246_v34 = vpop.f32.mrf.mxu2  ;;  %v1259_v37 = vpop.f32.mrf.mxu3 }
 0xdf8   :  { %v2109_v40 = vpop.eup %2108 }
 0xdf9   :  { %v1283_v43 = vadd.f32 1.0, %v2109_v40 }
 0xdfb   :  { %2110 = vrcp.f32 %v1283_v43  ;;  %v1295_v55 = vand.u32 2147483648, %v1283_v43  ;;  %v1293_v61 = vand.u32 2147483647, %v1283_v43  ;;  %vm1289_vm13 = vweird.f32 %v1283_v43 }
 0xdfd   :  { %v1296_v2 = vor.u32 1.1754944e-38, %v1295_v55  ;;  %vm1294_vm15 = vcmp.eq.f32.partialorder %v1293_v61, 8.507059e+37 }
 0xe01   :  { %v2111_v46 = vpop.eup %2110 }
 0xe02   :  { %v1285_v49 = vmul.f32 %v2111_v46, %v1283_v43  ;;  %vm1290_vm12 = vweird.f32 %v2111_v46 }
 0xe03   :  { %vm1291_vm14 = vmor %vm1289_vm13, %vm1290_vm12 }
 0xe04   :  { %v1286_v54 = vsub.f32 1.0, %v1285_v49 }
 0xe06   :  { %v1287_v57 = vmul.f32 %v2111_v46, %v1286_v54 }
 0xe08   :  { %v1288_v62 = vadd.f32 %v2111_v46, %v1287_v57 }
 0xe0a   :  { %v1292_v7 = vsel %vm1291_vm14, %v2111_v46, %v1288_v62 }
 0xe0b   :  { %v1297_v13 = vsel %vm1294_vm15, %v1296_v2, %v1292_v7 }
 0xe0c   :  { %v1300_v17 = vmul.f32 %v1299_v10, %v1297_v13  ;;  %v1303_v63 = vsub.f32 1.0, %v1297_v13  ;;  %v1313_v50 = vmul.f32 %v1311_v32, %v1297_v13 }
 0xe0e   :  { %v1301_v20 = vadd.f32 %v1300_v17, %v1278_v21 }
 0xe10   :  { %2112 = vtanh.f32 %v1301_v20 }
 0xe16   :  { %v2113_v48 = vpop.eup %2112 }
 0xe17   :  { %1305 = vrot.lane.b32.xlu1 %v2113_v48, %s2252_s29 }
 0xe1f   :  { %1350 = vrot.lane.b32.xlu1 %v1257_v18, %s2252_s29 }
 0xe43   :  { %v1353_v31 = vpop.permute.xlu2 %1352 }
 0xe89   :  { %v1306_v4 = vpop.permute.xlu1 %1305 }
 0xe8a   :  { %v1308_v51 = vmul.f32 %v1306_v4, %v1303_v63 }
 0xe8c   :  { %v1314_v44 = vadd.f32 %v1313_v50, %v1308_v51 }
 0xe8e   :  { %1393 = vrot.lane.b32.xlu2 %v1314_v44, %s2252_s29  ;;  %v1315_v24 = vpack.c.bf16 %v1314_v44, %v1314_v44 }
 0xe90   :  { %1317 = vrot.lane.b32.xlu0 %v1315_v24, %s2252_s29 }
 0xe91   :  { %v1351_v19 = vpop.permute.xlu1 %1350 }
 0xe92   :  { %v1354_v53 = vsel %vm184_vm1, %v1351_v19, %v1353_v31 }
 0xe98   :  { %1378 = vrot.lane.b32.xlu0 %v1376_v1, %s2252_s29 }
 0xee8   :  { %v1394_v61 = vpop.permute.xlu2 %1393 }
 0xf02   :  { %v1318_v11 = vpop.permute.xlu0 %1317 }
 0xf03   :  { %1970 = vmatmul.msk.bf16.vlgmr.msra.gmra.mxu1 %vm184_vm1, %v1318_v11 }
 0xf04   :  { %1489 = vmatpush.bf16.msra.mxu1 %v2480_v26 }
 0xf08   :  { %1490 = vmatpush.bf16.msra.mxu1 %v2486_v28 }
 0xf0a   :  { %v1379_v25 = vpop.permute.xlu0 %1378 }
 0xf0c   :  { %1491 = vmatpush.bf16.msra.mxu1 %v2496_v35 }
 0xf10   :  { %1492 = vmatpush.bf16.msra.mxu1 %v2506_v39 }
 0xf13   :  { %1971 = vmatmul.msk.bf16.vlgmr.msrb.gmra.mxu1 %vm184_vm1, %v1318_v11 }
 0xf14   :  { %1502 = vmatpush.bf16.msrb.mxu1 %v2519_v52 }
 0xf18   :  { %1503 = vmatpush.bf16.msrb.mxu1 %v2528_v59 }
 0xf1c   :  { %1504 = vmatpush.bf16.msrb.mxu1 %v2538_v0 }
 0xf20   :  { %1505 = vmatpush.bf16.msrb.mxu1 %v2548_v8 }
 0xf80   :  { %v1331_v23 = vpop.f32.mrf.mxu1 }
 0xf81   :  { %v1332_v36 = vadd.f32 %v1331_v23, %v2574_v14 }
 0xf83   :  { %v1356_v5 = vadd.f32 %v1354_v53, %v1332_v36 }
 0xf85   :  { %v1972_v38 = vmul.f32 -1.442695, %v1356_v5 }
 0xf87   :  { %2114 = vpow2.f32 %v1972_v38  ;;  %v1441_v38 = vld [vmem:[#allocation2 + $0x68] sm:$0xff] }
 0xf88   :  { %v1333_v12 = vpop.f32.mrf.mxu1 }
 0xf8d   :  { %v2115_v33 = vpop.eup %2114 }
 0xf8e   :  { %v1360_v27 = vadd.f32 1.0, %v2115_v33 }
 0xf90   :  { %2116 = vrcp.f32 %v1360_v27  ;;  %v1344_v60 = vpop.f32.mrf.mxu1  ;;  %v1372_v45 = vand.u32 2147483648, %v1360_v27  ;;  %v1370_v6 = vand.u32 2147483647, %v1360_v27  ;;  %vm1366_vm2 = vweird.f32 %v1360_v27 }
 0xf91   :  { %v1345_v34 = vadd.f32 %v1344_v60, %v2592_v15 }
 0xf92   :  { %v1373_v18 = vor.u32 1.1754944e-38, %v1372_v45  ;;  %vm1371_vm4 = vcmp.eq.f32.partialorder %v1370_v6, 8.507059e+37 }
 0xf96   :  { %v2117_v47 = vpop.eup %2116 }
 0xf97   :  { %v1362_v41 = vmul.f32 %v2117_v47, %v1360_v27  ;;  %vm1367_vm0 = vweird.f32 %v2117_v47 }
 0xf98   :  { %v1346_v58 = vpop.f32.mrf.mxu1  ;;  %vm1368_vm3 = vmor %vm1366_vm2, %vm1367_vm0 }
 0xf99   :  { %v1363_v42 = vsub.f32 1.0, %v1362_v41 }
 0xf9b   :  { %v1364_v3 = vmul.f32 %v2117_v47, %v1363_v42 }
 0xf9d   :  { %v1365_v16 = vadd.f32 %v2117_v47, %v1364_v3 }
 0xf9f   :  { %v1369_v22 = vsel %vm1368_vm3, %v2117_v47, %v1365_v16 }
 0xfa0   :  { %v1374_v30 = vsel %vm1371_vm4, %v1373_v18, %v1369_v22 }
 0xfa1   :  { %v1381_v37 = vmul.f32 %v1379_v25, %v1374_v30  ;;  %v1384_v46 = vsub.f32 1.0, %v1374_v30  ;;  %v1390_v54 = vmul.f32 %v1374_v30, %v2857_v29  ;;  %v1440_v29 = vld [vmem:[#allocation2 + $0x60] sm:$0xff] }
 0xfa3   :  { %v1382_v40 = vadd.f32 %v1381_v37, %v1345_v34 }
 0xfa5   :  { %2118 = vtanh.f32 %v1382_v40 }
 0xfab   :  { %v2119_v43 = vpop.eup %2118 }
 0xfac   :  { %1386 = vrot.lane.b32.xlu1 %v2119_v43, %s2252_s29 }
0x101e   :  { %v1387_v49 = vpop.permute.xlu1 %1386 }
0x101f   :  { %v1389_v55 = vmul.f32 %v1387_v49, %v1384_v46 }
0x1021   :  { %v1391_v57 = vadd.f32 %v1390_v54, %v1389_v55 }
0x1023   :  { %v2911_v62 = vsel %vm184_vm1, %v1394_v61, %v1391_v57 }
0x1024   :  { %1473 = vrot.lane.b32.xlu1 %v2911_v62, %s2252_s29  ;;  %v1397_v2 = vpack.c.bf16 %v2911_v62, %v2911_v62 }
0x1026   :  { %1406 = vmatmul.bf16.vlgmr.msrb.gmra.mxu2 %v1397_v2  ;;  %1419 = vmatmul.bf16.vlgmr.msra.gmra.mxu3 %v1397_v2 }
0x1027   :  { %1432 = vmatmul.bf16.vlgmr.msrb.gmra.mxu0 %v1397_v2 }
0x1096   :  { %v1474_v60 = vpop.permute.xlu1 %1473 }
0x10a4   :  { %v1433_v7 = vpop.f32.mrf.mxu0 }
0x10a5   :  { %1515 = vrot.lane.b32.xlu1 %v1433_v7, %s2252_s29  ;;  %v1539_v3 = vadd.f32 %v1433_v7, %v2553_v9 }
0x10a9   :  { %v1407_v10 = vpop.f32.mrf.mxu2  ;;  %v1420_v13 = vpop.f32.mrf.mxu3 }
0x10aa   :  { %v1442_v17 = vadd.f32 %v1440_v29, %v1407_v10  ;;  %v1462_v36 = vadd.f32 %v2832_v56, %v1420_v13 }
0x10ac   :  { %v1973_v21 = vmul.f32 -1.442695, %v1442_v17  ;;  %v1435_v20 = vpop.f32.mrf.mxu0 }
0x10ae   :  { %2120 = vpow2.f32 %v1973_v21 }
0x10b1   :  { %v1409_v48 = vpop.f32.mrf.mxu2  ;;  %v1422_v63 = vpop.f32.mrf.mxu3 }
0x10b4   :  { %v2121_v32 = vpop.eup %2120 }
0x10b5   :  { %v1446_v4 = vadd.f32 1.0, %v2121_v32 }
0x10b7   :  { %2122 = vrcp.f32 %v1446_v4  ;;  %v1458_v24 = vand.u32 2147483648, %v1446_v4  ;;  %v1456_v11 = vand.u32 2147483647, %v1446_v4  ;;  %vm1452_vm6 = vweird.f32 %v1446_v4 }
0x10b9   :  { %v1459_v23 = vor.u32 1.1754944e-38, %v1458_v24  ;;  %vm1457_vm8 = vcmp.eq.f32.partialorder %v1456_v11, 8.507059e+37 }
0x10bd   :  { %v2123_v51 = vpop.eup %2122 }
0x10be   :  { %v1448_v50 = vmul.f32 %v2123_v51, %v1446_v4  ;;  %vm1453_vm5 = vweird.f32 %v2123_v51 }
0x10bf   :  { %vm1454_vm7 = vmor %vm1452_vm6, %vm1453_vm5 }
0x10c0   :  { %v1449_v44 = vsub.f32 1.0, %v1448_v50 }
0x10c2   :  { %v1450_v1 = vmul.f32 %v2123_v51, %v1449_v44 }
0x10c4   :  { %v1451_v19 = vadd.f32 %v2123_v51, %v1450_v1 }
0x10c6   :  { %v1455_v31 = vsel %vm1454_vm7, %v2123_v51, %v1451_v19 }
0x10c7   :  { %v1460_v53 = vsel %vm1457_vm8, %v1459_v23, %v1455_v31 }
0x10c8   :  { %v1463_v5 = vmul.f32 %v1462_v36, %v1460_v53  ;;  %v1466_v27 = vsub.f32 1.0, %v1460_v53  ;;  %v1476_v58 = vmul.f32 %v1474_v60, %v1460_v53 }
0x10ca   :  { %v1464_v12 = vadd.f32 %v1463_v5, %v1441_v38 }
0x10cc   :  { %2124 = vtanh.f32 %v1464_v12 }
0x10d2   :  { %v2125_v33 = vpop.eup %2124 }
0x10d3   :  { %1468 = vrot.lane.b32.xlu0 %v2125_v33, %s2252_s29 }
0x10db   :  { %1513 = vrot.lane.b32.xlu0 %v1420_v13, %s2252_s29 }
0x1117   :  { %v1516_v22 = vpop.permute.xlu1 %1515 }
0x1145   :  { %v1469_v47 = vpop.permute.xlu0 %1468 }
0x1146   :  { %v1471_v41 = vmul.f32 %v1469_v47, %v1466_v27 }
0x1148   :  { %v1477_v42 = vadd.f32 %v1476_v58, %v1471_v41 }
0x114a   :  { %1556 = vrot.lane.b32.xlu1 %v1477_v42, %s2252_s29  ;;  %v1478_v45 = vpack.c.bf16 %v1477_v42, %v1477_v42 }
0x114c   :  { %1480 = vrot.lane.b32.xlu2 %v1478_v45, %s2252_s29 }
0x114d   :  { %v1514_v16 = vpop.permute.xlu0 %1513 }
0x1154   :  { %1541 = vrot.lane.b32.xlu2 %v1539_v3, %s2252_s29  ;;  %v1604_v3 = vld [vmem:[#allocation2 + $0x78] sm:$0xff] }
0x11a6   :  { %v1481_v6 = vpop.permute.xlu2 %1480 }
0x11a7   :  { %1974 = vmatmul.msk.bf16.vlgmr.msra.gmra.mxu1 %vm184_vm1, %v1481_v6 }
0x11a8   :  { %1652 = vmatpush.bf16.msra.mxu1 %v2480_v26 }
0x11ac   :  { %1653 = vmatpush.bf16.msra.mxu1 %v2486_v28  ;;  %v1517_v28 = vsel %vm184_vm1, %v1514_v16, %v1516_v22 }
0x11ae   :  { %v1542_v57 = vpop.permute.xlu2 %1541 }
0x11b0   :  { %1654 = vmatpush.bf16.msra.mxu1 %v2496_v35 }
0x11b4   :  { %1655 = vmatpush.bf16.msra.mxu1 %v2506_v39 }
0x11b7   :  { %1975 = vmatmul.msk.bf16.vlgmr.msrb.gmra.mxu1 %vm184_vm1, %v1481_v6 }
0x11b8   :  { %1665 = vmatpush.bf16.msrb.mxu1 %v2519_v52 }
0x11bc   :  { %1666 = vmatpush.bf16.msrb.mxu1 %v2528_v59  ;;  %v1557_v63 = vpop.permute.xlu1 %1556 }
0x11c0   :  { %1667 = vmatpush.bf16.msrb.mxu1 %v2538_v0 }
0x11c4   :  { %1668 = vmatpush.bf16.msrb.mxu1 %v2548_v8 }
0x1224   :  { %v1494_v18 = vpop.f32.mrf.mxu1 }
0x1225   :  { %v1495_v26 = vadd.f32 %v1494_v18, %v2574_v14 }
0x1227   :  { %v1519_v35 = vadd.f32 %v1517_v28, %v1495_v26 }
0x1229   :  { %v1976_v25 = vmul.f32 -1.442695, %v1519_v35 }
0x122b   :  { %2126 = vpow2.f32 %v1976_v25 }
0x122c   :  { %v1496_v39 = vpop.f32.mrf.mxu1 }
0x1231   :  { %v2127_v30 = vpop.eup %2126 }
0x1232   :  { %v1523_v34 = vadd.f32 1.0, %v2127_v30 }
0x1234   :  { %2128 = vrcp.f32 %v1523_v34  ;;  %v1507_v52 = vpop.f32.mrf.mxu1  ;;  %v1535_v8 = vand.u32 2147483648, %v1523_v34  ;;  %v1533_v46 = vand.u32 2147483647, %v1523_v34  ;;  %vm1529_vm10 = vweird.f32 %v1523_v34 }
0x1235   :  { %v1508_v2 = vadd.f32 %v1507_v52, %v2592_v15 }
0x1236   :  { %v1536_v54 = vor.u32 1.1754944e-38, %v1535_v8  ;;  %vm1534_vm12 = vcmp.eq.f32.partialorder %v1533_v46, 8.507059e+37 }
0x123a   :  { %v2129_v59 = vpop.eup %2128 }
0x123b   :  { %v1525_v37 = vmul.f32 %v2129_v59, %v1523_v34  ;;  %vm1530_vm9 = vweird.f32 %v2129_v59 }
0x123c   :  { %v1509_v0 = vpop.f32.mrf.mxu1  ;;  %vm1531_vm11 = vmor %vm1529_vm10, %vm1530_vm9 }
0x123d   :  { %v1526_v40 = vsub.f32 1.0, %v1525_v37 }
0x123f   :  { %v1527_v43 = vmul.f32 %v2129_v59, %v1526_v40 }
0x1241   :  { %v1528_v49 = vadd.f32 %v2129_v59, %v1527_v43 }
0x1243   :  { %v1532_v55 = vsel %vm1531_vm11, %v2129_v59, %v1528_v49 }
0x1244   :  { %v1537_v61 = vsel %vm1534_vm12, %v1536_v54, %v1532_v55 }
0x1245   :  { %v1544_v7 = vmul.f32 %v1542_v57, %v1537_v61  ;;  %v1547_v13 = vsub.f32 1.0, %v1537_v61  ;;  %v1553_v21 = vmul.f32 %v1537_v61, %v2911_v62  ;;  %v1603_v62 = vld [vmem:[#allocation2 + $0x70] sm:$0xff] }
0x1247   :  { %v1545_v10 = vadd.f32 %v1544_v7, %v1508_v2 }
0x1249   :  { %2130 = vtanh.f32 %v1545_v10 }
0x124f   :  { %v2131_v29 = vpop.eup %2130 }
0x1250   :  { %1549 = vrot.lane.b32.xlu0 %v2131_v29, %s2252_s29 }
0x12c2   :  { %v1550_v17 = vpop.permute.xlu0 %1549 }
0x12c3   :  { %v1552_v20 = vmul.f32 %v1550_v17, %v1547_v13 }
0x12c5   :  { %v1554_v48 = vadd.f32 %v1553_v21, %v1552_v20 }
0x12c7   :  { %v2941_v32 = vsel %vm184_vm1, %v1557_v63, %v1554_v48 }
0x12c8   :  { %1636 = vrot.lane.b32.xlu0 %v2941_v32, %s2252_s29  ;;  %v1560_v4 = vpack.c.bf16 %v2941_v32, %v2941_v32 }
0x12ca   :  { %1569 = vmatmul.bf16.vlgmr.msra.gmra.mxu2 %v1560_v4  ;;  %1582 = vmatmul.bf16.vlgmr.msrb.gmra.mxu3 %v1560_v4 }
0x12cb   :  { %1595 = vmatmul.bf16.vlgmr.msra.gmra.mxu0 %v1560_v4 }
0x133a   :  { %v1637_v22 = vpop.permute.xlu0 %1636 }
0x1348   :  { %v1596_v51 = vpop.f32.mrf.mxu0 }
0x1349   :  { %1678 = vrot.lane.b32.xlu0 %v1596_v51, %s2252_s29 }
0x134d   :  { %v1570_v50 = vpop.f32.mrf.mxu2  ;;  %v1583_v44 = vpop.f32.mrf.mxu3 }
0x134e   :  { %v1605_v24 = vadd.f32 %v1603_v62, %v1570_v50  ;;  %v1625_v58 = vadd.f32 %v2832_v56, %v1583_v44  ;;  %v1702_v56 = vadd.f32 %v1596_v51, %v2553_v9  ;;  %v2035_v51 = vld [vmem:[#allocation8 + $0x18] sm:$0xff]  ;;  %v2034_v50 = vld [vmem:[#allocation8 + $0x10] sm:$0xff]  ;;  %v2033_v62 = vld [vmem:[#allocation8 + $0x8] sm:$0xff] }
0x134f   :  { %1770 = vmatpush.bf16.msrb.mxu2 %v2035_v51 }
0x1350   :  { %v1977_v1 = vmul.f32 -1.442695, %v1605_v24  ;;  %v1598_v11 = vpop.f32.mrf.mxu0 }
0x1352   :  { %2132 = vpow2.f32 %v1977_v1 }
0x1353   :  { %1771 = vmatpush.bf16.msrb.mxu2 %v2034_v50 }
0x1355   :  { %v1572_v19 = vpop.f32.mrf.mxu2  ;;  %v1585_v23 = vpop.f32.mrf.mxu3 }
0x1357   :  { %1772 = vmatpush.bf16.msrb.mxu2 %v2033_v62 }
0x1358   :  { %v2133_v31 = vpop.eup %2132 }
0x1359   :  { %v1609_v36 = vadd.f32 1.0, %v2133_v31 }
0x135b   :  { %2134 = vrcp.f32 %v1609_v36  ;;  %v1621_v12 = vand.u32 2147483648, %v1609_v36  ;;  %v1619_v27 = vand.u32 2147483647, %v1609_v36  ;;  %vm1615_vm14 = vweird.f32 %v1609_v36 }
0x135d   :  { %v1622_v47 = vor.u32 1.1754944e-38, %v1621_v12  ;;  %vm1620_vm0 = vcmp.eq.f32.partialorder %v1619_v27, 8.507059e+37 }
0x1361   :  { %v2135_v53 = vpop.eup %2134 }
0x1362   :  { %v1611_v5 = vmul.f32 %v2135_v53, %v1609_v36  ;;  %vm1616_vm13 = vweird.f32 %v2135_v53 }
0x1363   :  { %vm1617_vm15 = vmor %vm1615_vm14, %vm1616_vm13 }
0x1364   :  { %v1612_v38 = vsub.f32 1.0, %v1611_v5  ;;  %v2047_v5 = vld [vmem:[%s2980_s9] ss:$0 sm:$0xff] }
0x1366   :  { %v1613_v33 = vmul.f32 %v2135_v53, %v1612_v38 }
0x1368   :  { %v1614_v60 = vadd.f32 %v2135_v53, %v1613_v33 }
0x136a   :  { %v1618_v41 = vsel %vm1617_vm15, %v2135_v53, %v1614_v60 }
0x136b   :  { %v1623_v42 = vsel %vm1620_vm0, %v1622_v47, %v1618_v41 }
0x136c   :  { %v1626_v45 = vmul.f32 %v1625_v58, %v1623_v42  ;;  %v1629_v18 = vsub.f32 1.0, %v1623_v42  ;;  %v1639_v35 = vmul.f32 %v1637_v22, %v1623_v42 }
0x136e   :  { %v1627_v6 = vadd.f32 %v1626_v45, %v1604_v3 }
0x1370   :  { %2136 = vtanh.f32 %v1627_v6 }
0x1376   :  { %v2137_v16 = vpop.eup %2136 }
0x1377   :  { %1631 = vrot.lane.b32.xlu2 %v2137_v16, %s2252_s29 }
0x137f   :  { %1676 = vrot.lane.b32.xlu2 %v1583_v44, %s2252_s29  ;;  %v2032_v44 = vld [vmem:[#allocation8] sm:$0xff] }
0x1380   :  { %1773 = vmatpush.bf16.msrb.mxu2 %v2032_v44 }
0x13bb   :  { %v1679_v59 = vpop.permute.xlu0 %1678 }
0x13d1   :  { %v1632_v26 = vpop.permute.xlu2 %1631 }
0x13d2   :  { %v1634_v28 = vmul.f32 %v1632_v26, %v1629_v18 }
0x13d4   :  { %v1640_v25 = vadd.f32 %v1639_v35, %v1634_v28 }
0x13d6   :  { %1719 = vrot.lane.b32.xlu0 %v1640_v25, %s2252_s29  ;;  %v1641_v39 = vpack.c.bf16 %v1640_v25, %v1640_v25 }
0x13d8   :  { %1643 = vrot.lane.b32.xlu1 %v1641_v39, %s2252_s29 }
0x13d9   :  { %v1677_v34 = vpop.permute.xlu2 %1676 }
0x13da   :  { %v1680_v0 = vsel %vm184_vm1, %v1677_v34, %v1679_v59 }
0x13e0   :  { %1704 = vrot.lane.b32.xlu1 %v1702_v56, %s2252_s29 }
0x1448   :  { %v1720_v23 = vpop.permute.xlu0 %1719 }
0x144a   :  { %v1644_v30 = vpop.permute.xlu1 %1643 }
0x144b   :  { %1978 = vmatmul.msk.bf16.vlgmr.msra.gmra.mxu1 %vm184_vm1, %v1644_v30 }
0x1452   :  { %v1705_v17 = vpop.permute.xlu1 %1704 }
0x145b   :  { %1979 = vmatmul.msk.bf16.vlgmr.msrb.gmra.mxu1 %vm184_vm1, %v1644_v30 }
0x14c8   :  { %v1657_v52 = vpop.f32.mrf.mxu1 }
0x14c9   :  { %v1658_v37 = vadd.f32 %v1657_v52, %v2574_v14 }
0x14cb   :  { %v1682_v40 = vadd.f32 %v1680_v0, %v1658_v37 }
0x14cd   :  { %v1980_v8 = vmul.f32 -1.442695, %v1682_v40 }
0x14cf   :  { %2138 = vpow2.f32 %v1980_v8 }
0x14d0   :  { %v1659_v43 = vpop.f32.mrf.mxu1 }
0x14d5   :  { %v2139_v46 = vpop.eup %2138 }
0x14d6   :  { %v1686_v9 = vadd.f32 1.0, %v2139_v46 }
0x14d8   :  { %2140 = vrcp.f32 %v1686_v9  ;;  %v1670_v49 = vpop.f32.mrf.mxu1  ;;  %v1698_v2 = vand.u32 2147483648, %v1686_v9  ;;  %v1696_v10 = vand.u32 2147483647, %v1686_v9  ;;  %vm1692_vm3 = vweird.f32 %v1686_v9 }
0x14d9   :  { %v1671_v20 = vadd.f32 %v1670_v49, %v2592_v15 }
0x14da   :  { %v1699_v14 = vor.u32 1.1754944e-38, %v1698_v2  ;;  %vm1697_vm5 = vcmp.eq.f32.partialorder %v1696_v10, 8.507059e+37 }
0x14de   :  { %v2141_v54 = vpop.eup %2140 }
0x14df   :  { %v1688_v55 = vmul.f32 %v2141_v54, %v1686_v9  ;;  %vm1693_vm2 = vweird.f32 %v2141_v54 }
0x14e0   :  { %v1672_v57 = vpop.f32.mrf.mxu1  ;;  %vm1694_vm4 = vmor %vm1692_vm3, %vm1693_vm2 }
0x14e1   :  { %v1689_v61 = vsub.f32 1.0, %v1688_v55 }
0x14e3   :  { %v1690_v7 = vmul.f32 %v2141_v54, %v1689_v61 }
0x14e5   :  { %v1691_v29 = vadd.f32 %v2141_v54, %v1690_v7 }
0x14e7   :  { %v1695_v13 = vsel %vm1694_vm4, %v2141_v54, %v1691_v29 }
0x14e8   :  { %v1700_v21 = vsel %vm1697_vm5, %v1699_v14, %v1695_v13 }
0x14e9   :  { %v1707_v48 = vmul.f32 %v1705_v17, %v1700_v21  ;;  %v1710_v24 = vsub.f32 1.0, %v1700_v21  ;;  %v1716_v11 = vmul.f32 %v1700_v21, %v2941_v32 }
0x14eb   :  { %v1708_v63 = vadd.f32 %v1707_v48, %v1671_v20 }
0x14ed   :  { %2142 = vtanh.f32 %v1708_v63 }
0x14f3   :  { %v2143_v4 = vpop.eup %2142 }
0x14f4   :  { %1712 = vrot.lane.b32.xlu2 %v2143_v4, %s2252_s29 }
0x154e   :  { %v1713_v1 = vpop.permute.xlu2 %1712 }
0x154f   :  { %v1715_v19 = vmul.f32 %v1713_v1, %v1710_v24 }
0x1551   :  { %v1717_v15 = vadd.f32 %v1716_v11, %v1715_v19 }
0x1553   :  { %v1722_v31 = vsel %vm184_vm1, %v1720_v23, %v1717_v15 }
0x1554   :  { %v1723_v36 = vpack.c.bf16 %v1722_v31, %v1722_v31 }
0x1556   :  { %1737 = vrot.lane.b32.xlu1 %v1723_v36, %s2252_s29 }
0x15c8   :  { %v1738_v53 = vpop.permute.xlu1 %1737 }
0x15c9   :  { %1997 = vmatmul.msk.bf16.vlgmr.msrb.gmra.mxu2 %vm184_vm1, %v1738_v53 }
0x164c   :  { %v1775_v32 = vpop.f32.mrf.mxu2 }
0x164d   :  { %v1776_v38 = vadd.f32 %v2047_v5, %v1775_v32 }
0x164f   :  { %1779 = vst [vmem:[#allocation9] sm:$0xff] %v1776_v38 }
0x1650   :  { %1790 = dma.vmem_to_hbm [thread:$0]  %s1786_s1, 128, %s1788_s23, [#allocation5]  }
0x1654   :  { %v1777_v12 = vpop.f32.mrf.mxu2 }
0x1655   :  { %2245 = dma.done.wait [#allocation5], 128  }
0x1656   :  { %2246 = vsyncadd [#allocation5], 4294967168 }
0x1657   :  { %1795 = vsyncpa [#allocation4], 1 }
0x1658   :  { %1796 = vsyncpa [#allocation7], 1 }
0x1659   :  { %1797 = vsyncpa [#allocation5], 1 }

</bundles_post_ra>
